<compile_context>
chip_gen: v7x
topology: tpu7x:2x2x1
jax: 0.10.0
libtpu: 0.0.40
codegen_flags: <defaults>
</compile_context>

<pallas_src>
import functools

import jax
import jax.numpy as jnp
from jax.experimental import pallas as pl
from jax.experimental.pallas import tpu as pltpu

D_IN, H1, H2, D_OUT = 28 * 28, 256, 32, 10
D_IN_PAD = 896      # 7 * 128 lanes
D_OUT_PAD = 128     # lane-dense output block
BN_EPS = 1e-5
NEG_BIG = -1e30     # bias for padded logit columns; ignored by log-softmax


def dnn_kernel(x_ref, w1_ref, t1_ref, w2_ref, t2_ref, w3_ref, b3_ref, o_ref):
    # ---- Linear(784->256) with BN folded into the weights, + shift, ReLU ----
    # (Dropout = identity in eval mode.)
    h = jnp.dot(x_ref[...], w1_ref[...], preferred_element_type=jnp.float32)
    h = jnp.maximum(h + t1_ref[...], 0.0)

    # ---- Linear(256->32) with BN folded, + shift, ReLU ----
    h = jnp.dot(h.astype(jnp.bfloat16), w2_ref[...],
                preferred_element_type=jnp.float32)
    h = jnp.maximum(h + t2_ref[...], 0.0)

    # ---- Linear(32->10, padded to 128 cols) + LogSoftmax(dim=1) ----
    logits = jnp.dot(h.astype(jnp.bfloat16), w3_ref[...],
                     preferred_element_type=jnp.float32) + b3_ref[...]
    m = jnp.max(logits, axis=-1, keepdims=True)
    z = logits - m
    lse = jnp.log(jnp.sum(jnp.exp(z), axis=-1, keepdims=True))
    o_ref[...] = z - lse


def fold_params(params):
    """Fold BN into the linear layers, pad K/N, cast weights to bf16."""
    (w1, b1, s1, t1, w2, b2, s2, t2, w3, b3) = params
    # y = (x@w + b)*s + t  ==  x@(w*s) + (b*s + t)
    w1f = w1 * s1
    t1f = b1 * s1 + t1
    w2f = w2 * s2
    t2f = b2 * s2 + t2
    # Pad K: 784 -> 896 with zero rows (x columns are zero-padded identically).
    w1p = jnp.zeros((D_IN_PAD, H1), jnp.float32).at[:D_IN, :].set(w1f)
    # Pad N: 10 -> 128 with zero weight columns and -1e30 bias (softmax-ignored).
    w3p = jnp.zeros((H2, D_OUT_PAD), jnp.float32).at[:, :D_OUT].set(w3)
    b3p = jnp.full((1, D_OUT_PAD), NEG_BIG, jnp.float32).at[:, :D_OUT].set(b3)
    return (w1p.astype(jnp.bfloat16), t1f.astype(jnp.float32),
            w2f.astype(jnp.bfloat16), t2f.astype(jnp.float32),
            w3p.astype(jnp.bfloat16), b3p.astype(jnp.float32))


@functools.partial(jax.jit, static_argnames=("tile_m",))
def dnn_forward(x_nchw, params, *, tile_m=256):
    """x_nchw: (B, 1, 28, 28) float32. Returns (B, 10) log-probabilities."""
    B = x_nchw.shape[0]
    w1, t1, w2, t2, w3, b3 = fold_params(params)

    # Flatten exactly like torch .view(B, -1), pad batch and K, cast to bf16.
    x = x_nchw.reshape(B, -1).astype(jnp.float32)
    b_pad = pl.cdiv(B, tile_m) * tile_m
    xp = jnp.zeros((b_pad, D_IN_PAD), jnp.bfloat16)
    xp = xp.at[:B, :D_IN].set(x.astype(jnp.bfloat16))

    grid = (b_pad // tile_m,)
    full = lambda shape: pl.BlockSpec(shape, lambda i: (0, 0))  # weights resident

    cost = pl.CostEstimate(
        flops=2 * b_pad * (D_IN_PAD * H1 + H1 * H2 + H2 * D_OUT_PAD),
        transcendentals=b_pad * (D_OUT_PAD + 1),
        bytes_accessed=(xp.size * 2
                        + (w1.size + w2.size + w3.size) * 2
                        + (t1.size + t2.size + b3.size) * 4
                        + b_pad * D_OUT_PAD * 4),
    )

    out = pl.pallas_call(
        dnn_kernel,
        out_shape=jax.ShapeDtypeStruct((b_pad, D_OUT_PAD), jnp.float32),
        grid=grid,
        in_specs=[
            pl.BlockSpec((tile_m, D_IN_PAD), lambda i: (i, 0)),   # x tile
            full((D_IN_PAD, H1)), full((1, H1)),
            full((H1, H2)),       full((1, H2)),
            full((H2, D_OUT_PAD)), full((1, D_OUT_PAD)),
        ],
        out_specs=pl.BlockSpec((tile_m, D_OUT_PAD), lambda i: (i, 0)),
        compiler_params=pltpu.CompilerParams(
            dimension_semantics=("parallel",)),
        cost_estimate=cost,
    )(xp, w1, t1, w2, t2, w3, b3)

    return out[:B, :D_OUT]


def init_params(key):
    """Deterministic synthetic parameters matching the PyTorch module's shapes."""
    ks = jax.random.split(key, 14)

    def linear(kw, kb, fan_in, fan_out):
        bound = 1.0 / jnp.sqrt(fan_in)
        w = jax.random.uniform(kw, (fan_in, fan_out), jnp.float32, -bound, bound)
        b = jax.random.uniform(kb, (1, fan_out), jnp.float32, -bound, bound)
        return w, b

    def bn_folded(kg, kb, km, kv, n):
        gamma = 1.0 + 0.1 * jax.random.normal(kg, (1, n), jnp.float32)
        beta = 0.1 * jax.random.normal(kb, (1, n), jnp.float32)
        running_mean = 0.05 * jax.random.normal(km, (1, n), jnp.float32)
        running_var = jax.random.uniform(kv, (1, n), jnp.float32, 0.5, 1.5)
        scale = gamma / jnp.sqrt(running_var + BN_EPS)
        shift = beta - running_mean * scale
        return scale, shift

    w1, b1 = linear(ks[0], ks[1], D_IN, H1)
    s1, t1 = bn_folded(ks[2], ks[3], ks[4], ks[5], H1)
    w2, b2 = linear(ks[6], ks[7], H1, H2)
    s2, t2 = bn_folded(ks[8], ks[9], ks[10], ks[11], H2)
    w3, b3 = linear(ks[12], ks[13], H2, D_OUT)
    return (w1, b1, s1, t1, w2, b2, s2, t2, w3, b3)


def reference_forward(x_nchw, params):
    """Plain-JAX reference mirroring the kernel's (bf16-quantized) numerics."""
    w1, t1, w2, t2, w3, b3 = fold_params(params)
    w1 = w1.astype(jnp.float32)
    w2 = w2.astype(jnp.float32)
    w3 = w3.astype(jnp.float32)
    B = x_nchw.shape[0]
    x = x_nchw.reshape(B, -1).astype(jnp.bfloat16).astype(jnp.float32)
    xp = jnp.zeros((B, D_IN_PAD), jnp.float32).at[:, :D_IN].set(x)
    h = jnp.maximum(xp @ w1 + t1, 0.0)
    h = h.astype(jnp.bfloat16).astype(jnp.float32)
    h = jnp.maximum(h @ w2 + t2, 0.0)
    h = h.astype(jnp.bfloat16).astype(jnp.float32)
    logits = h @ w3 + b3
    return jax.nn.log_softmax(logits, axis=1)[:, :D_OUT]


if __name__ == "__main__":
    key = jax.random.PRNGKey(0)
    k_x, k_p = jax.random.split(key)

    # Non-multiple-of-tile batch exercises the pad/slice path; two grid steps
    # let dimension_semantics=("parallel",) shard across v7x's 2 TensorCores.
    B = 384
    x = jax.random.normal(k_x, (B, 1, 28, 28), jnp.float32)   # NCHW like PyTorch
    params = init_params(k_p)

    out = dnn_forward(x, params)            # tile_m=256 default
    out = jax.block_until_ready(out)

    ref = reference_forward(x, params)
    assert out.shape == (B, D_OUT)
    assert bool(jnp.all(jnp.isfinite(out))), "non-finite outputs"
    assert jnp.allclose(out, ref, atol=1e-3, rtol=1e-3), "mismatch vs JAX reference"

    print("KERNEL_OK")
</pallas_src>

<mosaic_0001>
module attributes {stable_mosaic.version = 11 : i64} {
  func.func @dnn_kernel(%arg0: i32, %arg1: memref<256x896xbf16, #tpu.memory_space<vmem>>, %arg2: memref<896x256xbf16, #tpu.memory_space<vmem>>, %arg3: memref<1x256xf32, #tpu.memory_space<vmem>>, %arg4: memref<256x32xbf16, #tpu.memory_space<vmem>>, %arg5: memref<1x32xf32, #tpu.memory_space<vmem>>, %arg6: memref<32x128xbf16, #tpu.memory_space<vmem>>, %arg7: memref<1x128xf32, #tpu.memory_space<vmem>>, %arg8: memref<256x128xf32, #tpu.memory_space<vmem>>) attributes {dimension_semantics = [#tpu.dimension_semantics<parallel>], iteration_bounds = array<i64: 2>, scalar_prefetch = 0 : i64, scratch_operands = 0 : i64, tpu.core_type = #tpu.core_type<tc>, window_params = [{transform_indices = @transform_0, window_bounds = array<i64: 256, 896>}, {pipeline_mode = #tpu.pipeline_mode<synchronous>, transform_indices = @transform_1, window_bounds = array<i64: 896, 256>}, {pipeline_mode = #tpu.pipeline_mode<synchronous>, transform_indices = @transform_2, window_bounds = array<i64: 1, 256>}, {pipeline_mode = #tpu.pipeline_mode<synchronous>, transform_indices = @transform_3, window_bounds = array<i64: 256, 32>}, {pipeline_mode = #tpu.pipeline_mode<synchronous>, transform_indices = @transform_4, window_bounds = array<i64: 1, 32>}, {pipeline_mode = #tpu.pipeline_mode<synchronous>, transform_indices = @transform_5, window_bounds = array<i64: 32, 128>}, {pipeline_mode = #tpu.pipeline_mode<synchronous>, transform_indices = @transform_6, window_bounds = array<i64: 1, 128>}, {transform_indices = @transform_7, window_bounds = array<i64: 256, 128>}]} {
    %c0 = arith.constant 0 : index
    %c0_0 = arith.constant 0 : index
    %0 = vector.load %arg1[%c0, %c0_0] : memref<256x896xbf16, #tpu.memory_space<vmem>>, vector<256x896xbf16>
    %c0_1 = arith.constant 0 : index
    %c0_2 = arith.constant 0 : index
    %1 = vector.load %arg2[%c0_1, %c0_2] : memref<896x256xbf16, #tpu.memory_space<vmem>>, vector<896x256xbf16>
    %cst = arith.constant dense<0.000000e+00> : vector<256x256xf32>
    %2 = tpu.matmul %0, %1, %cst {dimension_numbers = #tpu.dot_dimension_numbers<[1], [0], [0], [1], [0, 0, 1, 1], [], []>} : vector<256x896xbf16>, vector<896x256xbf16>, vector<256x256xf32> -> vector<256x256xf32>
    %c0_3 = arith.constant 0 : index
    %c0_4 = arith.constant 0 : index
    %3 = vector.load %arg3[%c0_3, %c0_4] : memref<1x256xf32, #tpu.memory_space<vmem>>, vector<1x256xf32>
    %4 = vector.broadcast %3 : vector<1x256xf32> to vector<256x256xf32>
    %5 = arith.addf %2, %4 : vector<256x256xf32>
    %cst_5 = arith.constant 0.000000e+00 : f32
    %6 = vector.broadcast %cst_5 : f32 to vector<256x256xf32>
    %7 = arith.maximumf %5, %6 : vector<256x256xf32>
    %8 = arith.truncf %7 : vector<256x256xf32> to vector<256x256xbf16>
    %c0_6 = arith.constant 0 : index
    %c0_7 = arith.constant 0 : index
    %9 = vector.load %arg4[%c0_6, %c0_7] : memref<256x32xbf16, #tpu.memory_space<vmem>>, vector<256x32xbf16>
    %cst_8 = arith.constant dense<0.000000e+00> : vector<256x32xf32>
    %10 = tpu.matmul %8, %9, %cst_8 {dimension_numbers = #tpu.dot_dimension_numbers<[1], [0], [0], [1], [0, 0, 1, 1], [], []>} : vector<256x256xbf16>, vector<256x32xbf16>, vector<256x32xf32> -> vector<256x32xf32>
    %c0_9 = arith.constant 0 : index
    %c0_10 = arith.constant 0 : index
    %11 = vector.load %arg5[%c0_9, %c0_10] : memref<1x32xf32, #tpu.memory_space<vmem>>, vector<1x32xf32>
    %12 = vector.broadcast %11 : vector<1x32xf32> to vector<256x32xf32>
    %13 = arith.addf %10, %12 : vector<256x32xf32>
    %cst_11 = arith.constant 0.000000e+00 : f32
    %14 = vector.broadcast %cst_11 : f32 to vector<256x32xf32>
    %15 = arith.maximumf %13, %14 : vector<256x32xf32>
    %16 = arith.truncf %15 : vector<256x32xf32> to vector<256x32xbf16>
    %c0_12 = arith.constant 0 : index
    %c0_13 = arith.constant 0 : index
    %17 = vector.load %arg6[%c0_12, %c0_13] : memref<32x128xbf16, #tpu.memory_space<vmem>>, vector<32x128xbf16>
    %cst_14 = arith.constant dense<0.000000e+00> : vector<256x128xf32>
    %18 = tpu.matmul %16, %17, %cst_14 {dimension_numbers = #tpu.dot_dimension_numbers<[1], [0], [0], [1], [0, 0, 1, 1], [], []>} : vector<256x32xbf16>, vector<32x128xbf16>, vector<256x128xf32> -> vector<256x128xf32>
    %c0_15 = arith.constant 0 : index
    %c0_16 = arith.constant 0 : index
    %19 = vector.load %arg7[%c0_15, %c0_16] : memref<1x128xf32, #tpu.memory_space<vmem>>, vector<1x128xf32>
    %20 = vector.broadcast %19 : vector<1x128xf32> to vector<256x128xf32>
    %21 = arith.addf %18, %20 : vector<256x128xf32>
    %cst_17 = arith.constant dense<0xFF800000> : vector<256xf32>
    %22 = vector.multi_reduction <maximumf>, %21, %cst_17 [1] : vector<256x128xf32> to vector<256xf32>
    %23 = vector.shape_cast %22 : vector<256xf32> to vector<256x1xf32>
    %24 = vector.broadcast %23 : vector<256x1xf32> to vector<256x128xf32>
    %25 = arith.subf %21, %24 : vector<256x128xf32>
    %26 = math.exp %25 : vector<256x128xf32>
    %cst_18 = arith.constant dense<0.000000e+00> : vector<256xf32>
    %27 = vector.multi_reduction <add>, %26, %cst_18 [1] : vector<256x128xf32> to vector<256xf32>
    %28 = vector.shape_cast %27 : vector<256xf32> to vector<256x1xf32>
    %29 = math.log %28 : vector<256x1xf32>
    %30 = vector.broadcast %29 : vector<256x1xf32> to vector<256x128xf32>
    %31 = arith.subf %25, %30 : vector<256x128xf32>
    %c0_19 = arith.constant 0 : index
    %c0_20 = arith.constant 0 : index
    %32 = vector.load %arg8[%c0_19, %c0_20] : memref<256x128xf32, #tpu.memory_space<vmem>>, vector<256x128xf32>
    tpu.vector_store %arg8[%c0_19, %c0_20], %31 {strides = array<i32>} : memref<256x128xf32, #tpu.memory_space<vmem>>, vector<256x128xf32>,
    return
  }
  func.func @transform_0(%arg0: i32) -> (i32, i32) {
    %c0_i32 = arith.constant 0 : i32
    %c0_i32_0 = arith.constant 0 : i32
    return %arg0, %c0_i32 : i32, i32
  }
  func.func @transform_1(%arg0: i32) -> (i32, i32) {
    %c0_i32 = arith.constant 0 : i32
    %c0_i32_0 = arith.constant 0 : i32
    %c0_i32_1 = arith.constant 0 : i32
    return %c0_i32, %c0_i32_0 : i32, i32
  }
  func.func @transform_2(%arg0: i32) -> (i32, i32) {
    %c0_i32 = arith.constant 0 : i32
    %c0_i32_0 = arith.constant 0 : i32
    %c0_i32_1 = arith.constant 0 : i32
    return %c0_i32, %c0_i32_0 : i32, i32
  }
  func.func @transform_3(%arg0: i32) -> (i32, i32) {
    %c0_i32 = arith.constant 0 : i32
    %c0_i32_0 = arith.constant 0 : i32
    %c0_i32_1 = arith.constant 0 : i32
    return %c0_i32, %c0_i32_0 : i32, i32
  }
  func.func @transform_4(%arg0: i32) -> (i32, i32) {
    %c0_i32 = arith.constant 0 : i32
    %c0_i32_0 = arith.constant 0 : i32
    %c0_i32_1 = arith.constant 0 : i32
    return %c0_i32, %c0_i32_0 : i32, i32
  }
  func.func @transform_5(%arg0: i32) -> (i32, i32) {
    %c0_i32 = arith.constant 0 : i32
    %c0_i32_0 = arith.constant 0 : i32
    %c0_i32_1 = arith.constant 0 : i32
    return %c0_i32, %c0_i32_0 : i32, i32
  }
  func.func @transform_6(%arg0: i32) -> (i32, i32) {
    %c0_i32 = arith.constant 0 : i32
    %c0_i32_0 = arith.constant 0 : i32
    %c0_i32_1 = arith.constant 0 : i32
    return %c0_i32, %c0_i32_0 : i32, i32
  }
  func.func @transform_7(%arg0: i32) -> (i32, i32) {
    %c0_i32 = arith.constant 0 : i32
    %c0_i32_0 = arith.constant 0 : i32
    return %arg0, %c0_i32 : i32, i32
  }
}

</mosaic_0001>

<bundles_post_ra>
// kernel: dnn_forward.1
= control target key start
LH: loop header
LB: loop body
LE: loop exit
PB: predicated region body
PF: predicated region fallthrough
CT: control target
= control target key end

     0   :  { %s4785_s24 = smov 0   ;;  %s6097_s0 = inlined_call_operand.vmem [shape: bf16[512,896], index: 0, kind: input, shape index: {}]   ;;  %s6098_s1 = inlined_call_operand.vmem [shape: bf16[896,256], index: 1, kind: input, shape index: {}]   ;;  %s6099_s2 = inlined_call_operand.vmem [shape: f32[1,256], index: 2, kind: input, shape index: {}]   ;;  %s6100_s3 = inlined_call_operand.vmem [shape: bf16[256,32], index: 3, kind: input, shape index: {}]   ;;  %s6101_s4 = inlined_call_operand.vmem [shape: f32[1,32], index: 4, kind: input, shape index: {}]   ;;  %s6102_s5 = inlined_call_operand.vmem [shape: bf16[32,128], index: 5, kind: input, shape index: {}]   ;;  %s6103_s6 = inlined_call_operand.vmem [shape: f32[1,128], index: 6, kind: input, shape index: {}]   ;;  %s6104_s7 = inlined_call_operand.vmem [shape: f32[512,128], index: 7, kind: output, shape index: {}]  }
   0x1 LB: > { %s3527_s25 = sadd.s32 4294967295, %s4742_s24   ;;  %p3531_p0 = scmp.ge.s32.totalorder %s4742_s24, 1  ;;  %s4742_s24 = sphi %s4785_s24, %s17_s24  }
   0x2   : > { %p239_p1 = scmp.lt.s32.totalorder %s4742_s24, 3 }
   0x4   : > { %p240_p2 = pnand %p3531_p0, %p239_p1 }
   0x6   : > { %243 = sbr.rel (%p240_p2) target bundleno = 1403 (0x57b), region = 48 }
   0xd   : > { %v4796_v0 = vld [vmem:[%s6098_s1 + $0x104] ss:$8 sps:$4 sm:$0xff]   ;;  %v4801_v1 = vld [vmem:[%s6098_s1 + $0x100] ss:$8 sps:$4 sm:$0xff]   ;;  %v4807_v2 = vld [vmem:[%s6098_s1 + $0x114] ss:$8 sps:$4 sm:$0xff]  }
   0xe   : > { %1867 = vmatprep.subr.bf16.mxu0 %v4796_v0  ;;  %v4813_v3 = vld [vmem:[%s6098_s1 + $0x110] ss:$8 sps:$4 sm:$0xff]   ;;  %v4819_v4 = vld [vmem:[%s6098_s1 + $0x124] ss:$8 sps:$4 sm:$0xff]   ;;  %s3532_s13 = sshll.u32 %s3527_s25, 5  ;;  %vm2909_vm0 = vcmask 261120  }
   0xf   : > { %1868 = vmatpush1.bf16.msra.mxu0 %v4801_v1  ;;  %v4825_v5 = vld [vmem:[%s6098_s1 + $0x120] ss:$8 sps:$4 sm:$0xff]   ;;  %p273_p3 = scmp.lt.s32.totalorder %s3532_s13, 63  ;;  %v4831_v6 = vld [vmem:[%s6098_s1 + $0x134] ss:$8 sps:$4 sm:$0xff]  }
  0x10   : > { %1869 = vmatprep.subr.bf16.mxu0 %v4807_v2  ;;  %v4837_v7 = vld [vmem:[%s6098_s1 + $0x130] ss:$8 sps:$4 sm:$0xff]   ;;  %v4845_v8 = vld [vmem:[%s6098_s1 + $0x144] ss:$8 sps:$4 sm:$0xff]   ;;  %v4851_v9 = vld [vmem:[%s6098_s1 + $0x140] ss:$8 sps:$4 sm:$0xff]  }
  0x11   : > { %s6140_s13 = smov (!%p273_p3, %s3532_s13), 63  ;;  %v4858_v10 = vld [vmem:[%s6098_s1 + $0x154] ss:$8 sps:$4 sm:$0xff]   ;;  %v4864_v11 = vld [vmem:[%s6098_s1 + $0x150] ss:$8 sps:$4 sm:$0xff]  }
  0x12   : > { %s4252_s25 = smul.u32 28, %s6140_s13  ;;  %v4875_v12 = vld [vmem:[%s6098_s1 + $0x164] ss:$8 sps:$4 sm:$0xff]   ;;  %v4882_v14 = vld [vmem:[%s6098_s1 + $0x160] ss:$8 sps:$4 sm:$0xff]   ;;  %s3535_s11 = sshll.u32 %s6140_s13, 3 }
  0x13   : > { %1870 = vmatpush1.bf16.msra.mxu0 %v4813_v3  ;;  %v4888_v15 = vld [vmem:[%s6098_s1 + $0x174] ss:$8 sps:$4 sm:$0xff]   ;;  %v4894_v16 = vld [vmem:[%s6098_s1 + $0x170] ss:$8 sps:$4 sm:$0xff]   ;;  %v4900_v17 = vld [vmem:[%s6098_s1 + $0x184] ss:$8 sps:$4 sm:$0xff]   ;;  %s6028_s15 = scalar_lea.vmem %s6104_s7, %s3535_s11 }
  0x14   : > { %1871 = vmatprep.subr.bf16.mxu0 %v4819_v4  ;;  %s4869_s9 = scalar_lea.vmem %s6097_s0, %s4252_s25  ;;  %v4906_v18 = vld [vmem:[%s6098_s1 + $0x180] ss:$8 sps:$4 sm:$0xff]   ;;  %v4912_v19 = vld [vmem:[%s6098_s1 + $0x194] ss:$8 sps:$4 sm:$0xff]   ;;  %v4918_v20 = vld [vmem:[%s6098_s1 + $0x190] ss:$8 sps:$4 sm:$0xff]  }
  0x15   : > { %v4312_v13 = vld [vmem:[%s4869_s9 + $0xc] ss:$28 sps:$4 sm:$0xff]   ;;  %v4936_v23 = vld [vmem:[%s6098_s1 + $0x1b4] ss:$8 sps:$4 sm:$0xff]   ;;  %v4942_v24 = vld [vmem:[%s6098_s1 + $0x1b0] ss:$8 sps:$4 sm:$0xff]  }
  0x16   : > { %1899 = vmatprep.mubr.bf16.mxu0 %v4312_v13  ;;  %v4924_v21 = vld [vmem:[%s6098_s1 + $0x1a4] ss:$8 sps:$4 sm:$0xff]   ;;  %v4930_v22 = vld [vmem:[%s6098_s1 + $0x1a0] ss:$8 sps:$4 sm:$0xff]   ;;  %v4960_v27 = vld [vmem:[%s6098_s1 + $0x1d4] ss:$8 sps:$4 sm:$0xff]  }
  0x17   : > { %1872 = vmatpush1.bf16.msra.mxu0 %v4825_v5  ;;  %v4948_v25 = vld [vmem:[%s6098_s1 + $0x1c4] ss:$8 sps:$4 sm:$0xff]   ;;  %v4954_v26 = vld [vmem:[%s6098_s1 + $0x1c0] ss:$8 sps:$4 sm:$0xff]   ;;  %v4966_v28 = vld [vmem:[%s6098_s1 + $0x1d0] ss:$8 sps:$4 sm:$0xff]  }
  0x18   : > { %1873 = vmatprep.subr.bf16.mxu0 %v4831_v6  ;;  %v4972_v29 = vld [vmem:[%s6098_s1 + $0x1e4] ss:$8 sps:$4 sm:$0xff]   ;;  %v4978_v30 = vld [vmem:[%s6098_s1 + $0x1e0] ss:$8 sps:$4 sm:$0xff]   ;;  %v4984_v31 = vld [vmem:[%s6098_s1 + $0x1f4] ss:$8 sps:$4 sm:$0xff]  }
  0x19   : > { %v4989_v32 = vld [vmem:[%s6098_s1 + $0x1f0] ss:$8 sps:$4 sm:$0xff]   ;;  %v4394_v33 = vld [vmem:[%s6098_s1 + $0x4] ss:$8 sps:$4 sm:$0xff]   ;;  %v4396_v34 = vld [vmem:[%s6098_s1] ss:$8 sps:$4 sm:$0xff]  }
  0x1a   : > { %v4310_v35 = vld [vmem:[%s4869_s9 + $0x8] ss:$28 sps:$4 sm:$0xff]   ;;  %1674 = vmatprep.subr.bf16.mxu1 %v4394_v33  ;;  %v4400_v38 = vld [vmem:[%s6098_s1 + $0x14] ss:$8 sps:$4 sm:$0xff]   ;;  %v4405_v41 = vld [vmem:[%s6098_s1 + $0x10] ss:$8 sps:$4 sm:$0xff]  }
  0x1b   : > { %1874 = vmatpush1.bf16.msra.mxu0 %v4837_v7  ;;  %v4315_v36 = vld [vmem:[%s6098_s1 + $0x204] ss:$8 sps:$4 sm:$0xff]   ;;  %v4313_v37 = vld [vmem:[%s6098_s1 + $0x200] ss:$8 sps:$4 sm:$0xff]   ;;  %1675 = vmatpush1.bf16.msra.mxu1 %v4396_v34  ;;  %v4318_v39 = vld [vmem:[%s6098_s1 + $0x214] ss:$8 sps:$4 sm:$0xff]  }
  0x1c   : > { %1875 = vmatprep.subr.bf16.mxu0 %v4845_v8  ;;  %v4319_v40 = vld [vmem:[%s4869_s9 + $0x44] ss:$28 sps:$4 sm:$0xff]   ;;  %1676 = vmatprep.subr.bf16.mxu1 %v4400_v38  ;;  %v4316_v44 = vld [vmem:[%s6098_s1 + $0x210] ss:$8 sps:$4 sm:$0xff]   ;;  %v4411_v45 = vld [vmem:[%s6098_s1 + $0x34] ss:$8 sps:$4 sm:$0xff]  }
  0x1d   : > { %v4406_v42 = vld [vmem:[%s6098_s1 + $0x24] ss:$8 sps:$4 sm:$0xff]   ;;  %v4408_v43 = vld [vmem:[%s6098_s1 + $0x20] ss:$8 sps:$4 sm:$0xff]   ;;  %v4414_v48 = vld [vmem:[%s6098_s1 + $0x30] ss:$8 sps:$4 sm:$0xff]  }
  0x1e   : > { %v4324_v46 = vld [vmem:[%s6098_s1 + $0x224] ss:$8 sps:$4 sm:$0xff]   ;;  %v4321_v47 = vld [vmem:[%s4869_s9 + $0x40] ss:$28 sps:$4 sm:$0xff]   ;;  %v4328_v53 = vld [vmem:[%s6098_s1 + $0x230] ss:$8 sps:$4 sm:$0xff]  }
  0x1f   : > { %1876 = vmatpush1.bf16.msra.mxu0 %v4851_v9  ;;  %1677 = vmatpush1.bf16.msra.mxu1 %v4405_v41  ;;  %v4322_v49 = vld [vmem:[%s6098_s1 + $0x220] ss:$8 sps:$4 sm:$0xff]   ;;  %v4325_v50 = vld [vmem:[%s4869_s9 + $0x7c] ss:$28 sps:$4 sm:$0xff]   ;;  %v4415_v52 = vld [vmem:[%s6098_s1 + $0x44] ss:$8 sps:$4 sm:$0xff]  }
  0x20   : > { %1877 = vmatprep.subr.bf16.mxu0 %v4858_v10  ;;  %1678 = vmatprep.subr.bf16.mxu1 %v4406_v42  ;;  %v4330_v51 = vld [vmem:[%s6098_s1 + $0x234] ss:$8 sps:$4 sm:$0xff]   ;;  %v4417_v54 = vld [vmem:[%s6098_s1 + $0x40] ss:$8 sps:$4 sm:$0xff]   ;;  %v4336_v56 = vld [vmem:[%s6098_s1 + $0x244] ss:$8 sps:$4 sm:$0xff]  }
  0x21   : > { %v4420_v55 = vld [vmem:[%s6098_s1 + $0x54] ss:$8 sps:$4 sm:$0xff]   ;;  %v4426_v59 = vld [vmem:[%s6098_s1 + $0x50] ss:$8 sps:$4 sm:$0xff]   ;;  %v4334_v60 = vld [vmem:[%s6098_s1 + $0x240] ss:$8 sps:$4 sm:$0xff]  }
  0x22   : > { %v4327_v57 = vld [vmem:[%s4869_s9 + $0x78] ss:$28 sps:$4 sm:$0xff]   ;;  %v4427_v62 = vld [vmem:[%s6098_s1 + $0x64] ss:$8 sps:$4 sm:$0xff]   ;;  %v4429_v63 = vld [vmem:[%s6098_s1 + $0x60] ss:$8 sps:$4 sm:$0xff]  }
  0x23   : > { %1878 = vmatpush1.bf16.msra.mxu0 %v4864_v11  ;;  %1679 = vmatpush1.bf16.msra.mxu1 %v4408_v43  ;;  %v4331_v58 = vld [vmem:[%s4869_s9 + $0xb4] ss:$28 sps:$4 sm:$0xff]   ;;  %v4345_v34 = vld [vmem:[%s6098_s1 + $0x264] ss:$8 sps:$4 sm:$0xff]   ;;  %v4343_v38 = vld [vmem:[%s6098_s1 + $0x260] ss:$8 sps:$4 sm:$0xff]  }
  0x24   : > { %1879 = vmatprep.subr.bf16.mxu0 %v4875_v12  ;;  %1680 = vmatprep.subr.bf16.mxu1 %v4411_v45  ;;  %v4339_v61 = vld [vmem:[%s6098_s1 + $0x254] ss:$8 sps:$4 sm:$0xff]   ;;  %v4337_v13 = vld [vmem:[%s6098_s1 + $0x250] ss:$8 sps:$4 sm:$0xff]   ;;  %v4438_v41 = vld [vmem:[%s6098_s1 + $0x80] ss:$8 sps:$4 sm:$0xff]  }
  0x25   : > { %v4432_v33 = vld [vmem:[%s6098_s1 + $0x74] ss:$8 sps:$4 sm:$0xff]   ;;  %v4349_v42 = vld [vmem:[%s6098_s1 + $0x270] ss:$8 sps:$4 sm:$0xff]   ;;  %v4342_v45 = vld [vmem:[%s4869_s9 + $0xe8] ss:$28 sps:$4 sm:$0xff]  }
  0x26   : > { %v4441_v43 = vld [vmem:[%s6098_s1 + $0x94] ss:$8 sps:$4 sm:$0xff]  }
  0x27   : > { %1880 = vmatpush1.bf16.msra.mxu0 %v4882_v14  ;;  %1681 = vmatpush1.bf16.msra.mxu1 %v4414_v48  ;;  %v4355_v48 = vld [vmem:[%s6098_s1 + $0x280] ss:$8 sps:$4 sm:$0xff]  }
  0x28   : > { %1881 = vmatprep.subr.bf16.mxu0 %v4888_v15  ;;  %1682 = vmatprep.subr.bf16.mxu1 %v4415_v52  ;;  %v4450_v52 = vld [vmem:[%s6098_s1 + $0xa0] ss:$8 sps:$4 sm:$0xff]  }
  0x2b   : > { %1882 = vmatpush1.bf16.msra.mxu0 %v4894_v16  ;;  %1683 = vmatpush1.bf16.msra.mxu1 %v4417_v54  ;;  %v4453_v54 = vld [vmem:[%s6098_s1 + $0xb4] ss:$8 sps:$4 sm:$0xff]  }
  0x2c   : > { %1883 = vmatprep.subr.bf16.mxu0 %v4900_v17  ;;  %1684 = vmatprep.subr.bf16.mxu1 %v4420_v55  ;;  %v4348_v55 = vld [vmem:[%s4869_s9 + $0x120] ss:$28 sps:$4 sm:$0xff]  }
  0x2f   : > { %1884 = vmatpush1.bf16.msra.mxu0 %v4906_v18  ;;  %1685 = vmatpush1.bf16.msra.mxu1 %v4426_v59  ;;  %v4372_v59 = vld [vmem:[%s6098_s1 + $0x2b4] ss:$8 sps:$4 sm:$0xff]  }
  0x30   : > { %1885 = vmatprep.subr.bf16.mxu0 %v4912_v19  ;;  %1686 = vmatprep.subr.bf16.mxu1 %v4427_v62  ;;  %v4370_v62 = vld [vmem:[%s6098_s1 + $0x2b0] ss:$8 sps:$4 sm:$0xff]  }
  0x33   : > { %1886 = vmatpush1.bf16.msra.mxu0 %v4918_v20  ;;  %1687 = vmatpush1.bf16.msra.mxu1 %v4429_v63  ;;  %v4378_v63 = vld [vmem:[%s6098_s1 + $0x2c4] ss:$8 sps:$4 sm:$0xff]  }
  0x34   : > { %1887 = vmatprep.subr.bf16.mxu0 %v4924_v21  ;;  %1688 = vmatprep.subr.bf16.mxu1 %v4432_v33  ;;  %v4462_v33 = vld [vmem:[%s6098_s1 + $0xd4] ss:$8 sps:$4 sm:$0xff]  }
  0x37   : > { %1888 = vmatpush1.bf16.msra.mxu0 %v4930_v22 }
  0x38   : > { %1889 = vmatprep.subr.bf16.mxu0 %v4936_v23 }
  0x3b   : > { %1890 = vmatpush1.bf16.msra.mxu0 %v4942_v24 }
  0x3c   : > { %1891 = vmatprep.subr.bf16.mxu0 %v4948_v25 }
  0x3f   : > { %1892 = vmatpush1.bf16.msra.mxu0 %v4954_v26 }
  0x40   : > { %1893 = vmatprep.subr.bf16.mxu0 %v4960_v27 }
  0x43   : > { %1894 = vmatpush1.bf16.msra.mxu0 %v4966_v28 }
  0x44   : > { %1895 = vmatprep.subr.bf16.mxu0 %v4972_v29 }
  0x47   : > { %1896 = vmatpush1.bf16.msra.mxu0 %v4978_v30 }
  0x48   : > { %1897 = vmatprep.subr.bf16.mxu0 %v4984_v31 }
  0x4b   : > { %1898 = vmatpush1.bf16.msra.mxu0 %v4989_v32 }
  0x4c   : > { %2060 = vmatprep.subr.bf16.mxu0 %v4315_v36  ;;  %v4340_v36 = vld [vmem:[%s4869_s9 + $0xec] ss:$28 sps:$4 sm:$0xff]  }
  0x4e   : > { %1900 = vmatmul.mubr.bf16.vlgmr.msra.gmra.mrb[0].mxu0 %v4310_v35  ;;  %v4333_v35 = vld [vmem:[%s4869_s9 + $0xb0] ss:$28 sps:$4 sm:$0xff]  }
  0x4f   : > { %2061 = vmatpush1.bf16.msra.mxu0 %v4313_v37  ;;  %1909 = vmatprep.mubr.bf16.mxu0 %v4319_v40  ;;  %v4435_v37 = vld [vmem:[%s6098_s1 + $0x70] ss:$8 sps:$4 sm:$0xff]   ;;  %v4436_v40 = vld [vmem:[%s6098_s1 + $0x84] ss:$8 sps:$4 sm:$0xff]  }
  0x50   : > { %2062 = vmatprep.subr.bf16.mxu0 %v4318_v39  ;;  %v4351_v39 = vld [vmem:[%s6098_s1 + $0x274] ss:$8 sps:$4 sm:$0xff]   ;;  %1689 = vmatpush1.bf16.msra.mxu1 %v4435_v37  ;;  %v4376_v37 = vld [vmem:[%s6098_s1 + $0x2c0] ss:$8 sps:$4 sm:$0xff]  }
  0x51   : > { %1690 = vmatprep.subr.bf16.mxu1 %v4436_v40  ;;  %v4471_v40 = vld [vmem:[%s6098_s1 + $0xe0] ss:$8 sps:$4 sm:$0xff]  }
  0x53   : > { %2063 = vmatpush1.bf16.msra.mxu0 %v4316_v44  ;;  %v4357_v44 = vld [vmem:[%s6098_s1 + $0x284] ss:$8 sps:$4 sm:$0xff]  }
  0x54   : > { %2064 = vmatprep.subr.bf16.mxu0 %v4324_v46  ;;  %1691 = vmatpush1.bf16.msra.mxu1 %v4438_v41  ;;  %v4447_v46 = vld [vmem:[%s6098_s1 + $0x90] ss:$8 sps:$4 sm:$0xff]  }
  0x55   : > { %1692 = vmatprep.subr.bf16.mxu1 %v4441_v43  ;;  %v4379_v41 = vld [vmem:[%s6098_s1 + $0x2d0] ss:$8 sps:$4 sm:$0xff]   ;;  %v4474_v43 = vld [vmem:[%s6098_s1 + $0xf4] ss:$8 sps:$4 sm:$0xff]  }
  0x56   : > { %1910 = vmatmul.mubr.bf16.gmra.mrb[4].mxu0 %v4321_v47  ;;  %v4346_v47 = vld [vmem:[%s4869_s9 + $0x124] ss:$28 sps:$4 sm:$0xff]  }
  0x57   : > { %2065 = vmatpush1.bf16.msra.mxu0 %v4322_v49  ;;  %1919 = vmatprep.mubr.bf16.mxu0 %v4325_v50  ;;  %v4360_v49 = vld [vmem:[%s6098_s1 + $0x294] ss:$8 sps:$4 sm:$0xff]   ;;  %v4448_v50 = vld [vmem:[%s6098_s1 + $0xa4] ss:$8 sps:$4 sm:$0xff]  }
  0x58   : > { %2066 = vmatprep.subr.bf16.mxu0 %v4330_v51  ;;  %v4480_v51 = vld [vmem:[%s4869_s9 + $0x4] ss:$28 sps:$4 sm:$0xff]   ;;  %1693 = vmatpush1.bf16.msra.mxu1 %v4447_v46  ;;  %v4367_v46 = vld [vmem:[%s4869_s9 + $0x1cc] ss:$28 sps:$4 sm:$0xff]  }
  0x59   : > { %1694 = vmatprep.subr.bf16.mxu1 %v4448_v50  ;;  %1706 = vmatprep.mubr.bf16.mxu1 %v4480_v51  ;;  %v4391_v50 = vld [vmem:[%s6098_s1 + $0x2f0] ss:$8 sps:$4 sm:$0xff]  }
  0x5a   : > { %v4487_v51 = vld [vmem:[%s4869_s9 + $0x3c] ss:$28 sps:$4 sm:$0xff]  }
  0x5b   : > { %2067 = vmatpush1.bf16.msra.mxu0 %v4328_v53  ;;  %v4358_v53 = vld [vmem:[%s6098_s1 + $0x290] ss:$8 sps:$4 sm:$0xff]  }
  0x5c   : > { %2068 = vmatprep.subr.bf16.mxu0 %v4336_v56  ;;  %v4366_v56 = vld [vmem:[%s6098_s1 + $0x2a4] ss:$8 sps:$4 sm:$0xff]   ;;  %1695 = vmatpush1.bf16.msra.mxu1 %v4450_v52 }
  0x5d   : > { %1696 = vmatprep.subr.bf16.mxu1 %v4453_v54  ;;  %v4404_v52 = vld [vmem:[%s6098_s1 + $0x304] ss:$8 sps:$4 sm:$0xff]  }
  0x5e   : > { %1920 = vmatmul.mubr.bf16.gmra.mrb[8].mxu0 %v4327_v57  ;;  %v4352_v57 = vld [vmem:[%s4869_s9 + $0x15c] ss:$28 sps:$4 sm:$0xff]   ;;  %v4373_v54 = vld [vmem:[%s4869_s9 + $0x204] ss:$28 sps:$4 sm:$0xff]  }
  0x5f   : > { %1929 = vmatprep.mubr.bf16.mxu0 %v4331_v58  ;;  %2069 = vmatpush1.bf16.msra.mxu0 %v4334_v60  ;;  %v4364_v58 = vld [vmem:[%s6098_s1 + $0x2a0] ss:$8 sps:$4 sm:$0xff]   ;;  %v4456_v60 = vld [vmem:[%s6098_s1 + $0xb0] ss:$8 sps:$4 sm:$0xff]  }
  0x60   : > { %2070 = vmatprep.subr.bf16.mxu0 %v4339_v61  ;;  %v4457_v61 = vld [vmem:[%s6098_s1 + $0xc4] ss:$8 sps:$4 sm:$0xff]   ;;  %1697 = vmatpush1.bf16.msra.mxu1 %v4456_v60 }
  0x61   : > { %1698 = vmatprep.subr.bf16.mxu1 %v4457_v61  ;;  %v4525_v60 = vld [vmem:[%s4869_s9 + $0x150] ss:$28 sps:$4 sm:$0xff]  }
  0x62   : > { %v4532_v61 = vld [vmem:[%s4869_s9 + $0x18c] ss:$28 sps:$4 sm:$0xff]  }
  0x63   : > { %2071 = vmatpush1.bf16.msra.mxu0 %v4337_v13  ;;  %v4459_v13 = vld [vmem:[%s6098_s1 + $0xc0] ss:$8 sps:$4 sm:$0xff]  }
  0x64   : > { %2072 = vmatprep.subr.bf16.mxu0 %v4345_v34  ;;  %v4354_v34 = vld [vmem:[%s4869_s9 + $0x158] ss:$28 sps:$4 sm:$0xff]   ;;  %1699 = vmatpush1.bf16.msra.mxu1 %v4459_v13  ;;  %v4534_v13 = vld [vmem:[%s4869_s9 + $0x188] ss:$28 sps:$4 sm:$0xff]  }
  0x65   : > { %1700 = vmatprep.subr.bf16.mxu1 %v4462_v33  ;;  %v4538_v33 = vld [vmem:[%s4869_s9 + $0x1c4] ss:$28 sps:$4 sm:$0xff]  }
  0x66   : > { %1930 = vmatmul.mubr.bf16.gmra.mrb[12].mxu0 %v4333_v35  ;;  %v4468_v35 = vld [vmem:[%s6098_s1 + $0xd0] ss:$8 sps:$4 sm:$0xff]  }
  0x67   : > { %1939 = vmatprep.mubr.bf16.mxu0 %v4340_v36  ;;  %2073 = vmatpush1.bf16.msra.mxu0 %v4343_v38  ;;  %v4361_v36 = vld [vmem:[%s4869_s9 + $0x194] ss:$28 sps:$4 sm:$0xff]  }
  0x68   : > { %2074 = vmatprep.subr.bf16.mxu0 %v4351_v39  ;;  %v4381_v38 = vld [vmem:[%s6098_s1 + $0x2d4] ss:$8 sps:$4 sm:$0xff]   ;;  %v4469_v39 = vld [vmem:[%s6098_s1 + $0xe4] ss:$8 sps:$4 sm:$0xff]   ;;  %1701 = vmatpush1.bf16.msra.mxu1 %v4468_v35  ;;  %v4514_v35 = vld [vmem:[%s6098_s1 + $0x360] ss:$8 sps:$4 sm:$0xff]  }
  0x69   : > { %1702 = vmatprep.subr.bf16.mxu1 %v4469_v39  ;;  %v4544_v39 = vld [vmem:[%s4869_s9 + $0x1f8] ss:$28 sps:$4 sm:$0xff]  }
  0x6b   : > { %2075 = vmatpush1.bf16.msra.mxu0 %v4349_v42  ;;  %v4387_v42 = vld [vmem:[%s6098_s1 + $0x2e4] ss:$8 sps:$4 sm:$0xff]  }
  0x6c   : > { %2076 = vmatprep.subr.bf16.mxu0 %v4357_v44  ;;  %v4363_v44 = vld [vmem:[%s4869_s9 + $0x190] ss:$28 sps:$4 sm:$0xff]   ;;  %1703 = vmatpush1.bf16.msra.mxu1 %v4471_v40  ;;  %v4455_v40 = vld [vmem:[%s4869_s9 + $0x128] ss:$28 sps:$4 sm:$0xff]  }
  0x6d   : > { %1704 = vmatprep.subr.bf16.mxu1 %v4474_v43  ;;  %v4550_v43 = vld [vmem:[%s4869_s9 + $0x26c] ss:$28 sps:$4 sm:$0xff]  }
  0x6e   : > { %1940 = vmatmul.mubr.bf16.gmra.mrb[16].mxu0 %v4342_v45  ;;  %v4477_v45 = vld [vmem:[%s6098_s1 + $0xf0] ss:$8 sps:$4 sm:$0xff]  }
  0x6f   : > { %1949 = vmatprep.mubr.bf16.mxu0 %v4346_v47  ;;  %2077 = vmatpush1.bf16.msra.mxu0 %v4355_v48  ;;  %v4385_v47 = vld [vmem:[%s6098_s1 + $0x2e0] ss:$8 sps:$4 sm:$0xff]   ;;  %v4393_v48 = vld [vmem:[%s6098_s1 + $0x2f4] ss:$8 sps:$4 sm:$0xff]  }
  0x70   : > { %2078 = vmatprep.subr.bf16.mxu0 %v4360_v49  ;;  %v4478_v49 = vld [vmem:[%s4869_s9] ss:$28 sps:$4 sm:$0xff]   ;;  %1705 = vmatpush1.bf16.msra.mxu1 %v4477_v45 }
  0x71   : > { %3964 = vmatprep.subr.bf16.mxu1 %v4796_v0  ;;  %v4375_v0 = vld [vmem:[%s4869_s9 + $0x200] ss:$28 sps:$4 sm:$0xff]  }
  0x72   : > { %v4472_v45 = vld [vmem:[%s4869_s9 + $0x19c] ss:$28 sps:$4 sm:$0xff]  }
  0x73   : > { %2079 = vmatpush1.bf16.msra.mxu0 %v4358_v53  ;;  %v4369_v53 = vld [vmem:[%s4869_s9 + $0x1c8] ss:$28 sps:$4 sm:$0xff]   ;;  %1707 = vmatmul.mubr.bf16.vlgmr.msra.gmra.mrb[0].mxu1 %v4478_v49  ;;  %v4481_v49 = vld [vmem:[%s4869_s9 + $0x1d4] ss:$28 sps:$4 sm:$0xff]  }
  0x74   : > { %2080 = vmatprep.subr.bf16.mxu0 %v4366_v56  ;;  %1716 = vmatprep.mubr.bf16.mxu1 %v4487_v51  ;;  %v4493_v56 = vld [vmem:[%s4869_s9 + $0x74] ss:$28 sps:$4 sm:$0xff]   ;;  %v4558_v51 = vld [vmem:[%s4869_s9 + $0x2dc] ss:$28 sps:$4 sm:$0xff]  }
  0x75   : > { %3980 = vmatpush1.bf16.msra.mxu1 %v4801_v1  ;;  %v4495_v1 = vld [vmem:[%s4869_s9 + $0x70] ss:$28 sps:$4 sm:$0xff]  }
  0x76   : > { %1950 = vmatmul.mubr.bf16.gmra.mrb[20].mxu0 %v4348_v55  ;;  %v4489_v55 = vld [vmem:[%s4869_s9 + $0x38] ss:$28 sps:$4 sm:$0xff]   ;;  %3965 = vmatprep.subr.bf16.mxu1 %v4807_v2  ;;  %v4502_v2 = vld [vmem:[%s4869_s9 + $0xac] ss:$28 sps:$4 sm:$0xff]  }
  0x77   : > { %1959 = vmatprep.mubr.bf16.mxu0 %v4352_v57  ;;  %2081 = vmatpush1.bf16.msra.mxu0 %v4364_v58  ;;  %v4382_v57 = vld [vmem:[%s4869_s9 + $0x23c] ss:$28 sps:$4 sm:$0xff]   ;;  %v4413_v58 = vld [vmem:[%s4869_s9 + $0x48] ss:$28 sps:$4 sm:$0xff]  }
  0x78   : > { %2082 = vmatprep.subr.bf16.mxu0 %v4372_v59  ;;  %v4444_v59 = vld [vmem:[%s6098_s1 + $0x320] ss:$8 sps:$4 sm:$0xff]  }
  0x79   : > { %3981 = vmatpush1.bf16.msra.mxu1 %v4813_v3  ;;  %v4384_v3 = vld [vmem:[%s4869_s9 + $0x238] ss:$28 sps:$4 sm:$0xff]  }
  0x7a   : > { %3966 = vmatprep.subr.bf16.mxu1 %v4819_v4  ;;  %v4388_v4 = vld [vmem:[%s4869_s9 + $0x274] ss:$28 sps:$4 sm:$0xff]  }
  0x7b   : > { %2083 = vmatpush1.bf16.msra.mxu0 %v4370_v62  ;;  %1717 = vmatmul.mubr.bf16.gmra.mrb[4].mxu1 %v4489_v55  ;;  %v4422_v62 = vld [vmem:[%s4869_s9 + $0x80] ss:$28 sps:$4 sm:$0xff]   ;;  %v4562_v55 = vld [vmem:[%s4869_s9 + $0x314] ss:$28 sps:$4 sm:$0xff]  }
  0x7c   : > { %2084 = vmatprep.subr.bf16.mxu0 %v4378_v63  ;;  %1726 = vmatprep.mubr.bf16.mxu1 %v4493_v56  ;;  %v4484_v63 = vld [vmem:[%s6098_s1 + $0x340] ss:$8 sps:$4 sm:$0xff]  }
  0x7d   : > { %3982 = vmatpush1.bf16.msra.mxu1 %v4825_v5  ;;  %v4504_v5 = vld [vmem:[%s4869_s9 + $0xa8] ss:$28 sps:$4 sm:$0xff]  }
  0x7e   : > { %1960 = vmatmul.mubr.bf16.gmra.mrb[24].mxu0 %v4354_v34  ;;  %3967 = vmatprep.subr.bf16.mxu1 %v4831_v6  ;;  %v4508_v6 = vld [vmem:[%s4869_s9 + $0xe4] ss:$28 sps:$4 sm:$0xff]   ;;  %v4434_v34 = vld [vmem:[%s4869_s9 + $0xb8] ss:$28 sps:$4 sm:$0xff]  }
  0x7f   : > { %1969 = vmatprep.mubr.bf16.mxu0 %v4361_v36  ;;  %2085 = vmatpush1.bf16.msra.mxu0 %v4376_v37  ;;  %v4540_v36 = vld [vmem:[%s4869_s9 + $0x1c0] ss:$28 sps:$4 sm:$0xff]   ;;  %v4443_v37 = vld [vmem:[%s4869_s9 + $0xf0] ss:$28 sps:$4 sm:$0xff]   ;;  %v4492_v56 = vld [vmem:[%s4869_s9 + $0x208] ss:$28 sps:$4 sm:$0xff]  }
  0x80   : > { %2086 = vmatprep.subr.bf16.mxu0 %v4381_v38  ;;  %v4451_v38 = vld [vmem:[%s4869_s9 + $0x12c] ss:$28 sps:$4 sm:$0xff]  }
  0x81   : > { %3983 = vmatpush1.bf16.msra.mxu1 %v4837_v7  ;;  %v4390_v7 = vld [vmem:[%s4869_s9 + $0x270] ss:$28 sps:$4 sm:$0xff]  }
  0x82   : > { %3968 = vmatprep.subr.bf16.mxu1 %v4845_v8  ;;  %v4399_v8 = vld [vmem:[%s4869_s9 + $0x14] ss:$28 sps:$4 sm:$0xff]  }
  0x83   : > { %2087 = vmatpush1.bf16.msra.mxu0 %v4379_v41  ;;  %1727 = vmatmul.mubr.bf16.gmra.mrb[8].mxu1 %v4495_v1  ;;  %v4460_v41 = vld [vmem:[%s4869_s9 + $0x164] ss:$28 sps:$4 sm:$0xff]   ;;  %v4566_v1 = vld [vmem:[%s4869_s9 + $0x34c] ss:$28 sps:$4 sm:$0xff]  }
  0x84   : > { %2088 = vmatprep.subr.bf16.mxu0 %v4387_v42  ;;  %1736 = vmatprep.mubr.bf16.mxu1 %v4502_v2  ;;  %v4548_v42 = vld [vmem:[%s4869_s9 + $0x230] ss:$28 sps:$4 sm:$0xff]   ;;  %v4498_v2 = vld [vmem:[%s4869_s9 + $0x240] ss:$28 sps:$4 sm:$0xff]  }
  0x85   : > { %3984 = vmatpush1.bf16.msra.mxu1 %v4851_v9  ;;  %v4510_v9 = vld [vmem:[%s4869_s9 + $0xe0] ss:$28 sps:$4 sm:$0xff]  }
  0x86   : > { %1970 = vmatmul.mubr.bf16.gmra.mrb[28].mxu0 %v4363_v44  ;;  %3969 = vmatprep.subr.bf16.mxu1 %v4858_v10  ;;  %v4517_v10 = vld [vmem:[%s4869_s9 + $0x11c] ss:$28 sps:$4 sm:$0xff]  }
  0x87   : > { %1979 = vmatprep.mubr.bf16.mxu0 %v4367_v46  ;;  %2089 = vmatpush1.bf16.msra.mxu0 %v4385_v47  ;;  %v4464_v44 = vld [vmem:[%s4869_s9 + $0x160] ss:$28 sps:$4 sm:$0xff]   ;;  %v4552_v46 = vld [vmem:[%s4869_s9 + $0x268] ss:$28 sps:$4 sm:$0xff]  }
  0x88   : > { %2090 = vmatprep.subr.bf16.mxu0 %v4393_v48  ;;  %v4554_v47 = vld [vmem:[%s4869_s9 + $0x2a4] ss:$28 sps:$4 sm:$0xff]   ;;  %v4476_v48 = vld [vmem:[%s4869_s9 + $0x198] ss:$28 sps:$4 sm:$0xff]  }
  0x89   : > { %3985 = vmatpush1.bf16.msra.mxu1 %v4864_v11  ;;  %v4397_v11 = vld [vmem:[%s4869_s9 + $0x10] ss:$28 sps:$4 sm:$0xff]  }
  0x8a   : > { %3970 = vmatprep.subr.bf16.mxu1 %v4875_v12  ;;  %v4402_v12 = vld [vmem:[%s6098_s1 + $0x300] ss:$8 sps:$4 sm:$0xff]  }
  0x8b   : > { %2091 = vmatpush1.bf16.msra.mxu0 %v4391_v50  ;;  %1737 = vmatmul.mubr.bf16.gmra.mrb[12].mxu1 %v4504_v5  ;;  %v4556_v50 = vld [vmem:[%s4869_s9 + $0x2a0] ss:$28 sps:$4 sm:$0xff]   ;;  %v4572_v5 = vld [vmem:[%s4869_s9 + $0x2ac] ss:$28 sps:$4 sm:$0xff]  }
  0x8c   : > { %2253 = vmatprep.subr.bf16.mxu0 %v4404_v52  ;;  %1746 = vmatprep.mubr.bf16.mxu1 %v4508_v6  ;;  %v4483_v52 = vld [vmem:[%s4869_s9 + $0x1d0] ss:$28 sps:$4 sm:$0xff]   ;;  %v4507_v6 = vld [vmem:[%s4869_s9 + $0x278] ss:$28 sps:$4 sm:$0xff]  }
  0x8d   : > { %3986 = vmatpush1.bf16.msra.mxu1 %v4882_v14  ;;  %v4409_v14 = vld [vmem:[%s4869_s9 + $0x4c] ss:$28 sps:$4 sm:$0xff]  }
  0x8e   : > { %1980 = vmatmul.mubr.bf16.gmra.mrb[32].mxu0 %v4369_v53  ;;  %3971 = vmatprep.subr.bf16.mxu1 %v4888_v15  ;;  %v4425_v15 = vld [vmem:[%s6098_s1 + $0x314] ss:$8 sps:$4 sm:$0xff]   ;;  %v4490_v53 = vld [vmem:[%s4869_s9 + $0x20c] ss:$28 sps:$4 sm:$0xff]  }
  0x8f   : > { %1989 = vmatprep.mubr.bf16.mxu0 %v4373_v54  ;;  %v4560_v54 = vld [vmem:[%s4869_s9 + $0x2d8] ss:$28 sps:$4 sm:$0xff]  }
  0x91   : > { %3987 = vmatpush1.bf16.msra.mxu1 %v4894_v16  ;;  %v4519_v16 = vld [vmem:[%s4869_s9 + $0x118] ss:$28 sps:$4 sm:$0xff]  }
  0x92   : > { %3972 = vmatprep.subr.bf16.mxu1 %v4900_v17  ;;  %v4523_v17 = vld [vmem:[%s4869_s9 + $0x154] ss:$28 sps:$4 sm:$0xff]  }
  0x93   : > { %1747 = vmatmul.mubr.bf16.gmra.mrb[16].mxu1 %v4510_v9  ;;  %v4574_v9 = vld [vmem:[%s4869_s9 + $0x2e4] ss:$28 sps:$4 sm:$0xff]  }
  0x94   : > { %1756 = vmatprep.mubr.bf16.mxu1 %v4517_v10  ;;  %v4513_v10 = vld [vmem:[%s4869_s9 + $0x2b0] ss:$28 sps:$4 sm:$0xff]  }
  0x95   : > { %3988 = vmatpush1.bf16.msra.mxu1 %v4906_v18  ;;  %v4423_v18 = vld [vmem:[%s6098_s1 + $0x310] ss:$8 sps:$4 sm:$0xff]  }
  0x96   : > { %1990 = vmatmul.mubr.bf16.gmra.mrb[36].mxu0 %v4375_v0  ;;  %3973 = vmatprep.subr.bf16.mxu1 %v4912_v19  ;;  %v4446_v19 = vld [vmem:[%s6098_s1 + $0x324] ss:$8 sps:$4 sm:$0xff]  }
  0x97   : > { %1999 = vmatprep.mubr.bf16.mxu0 %v4382_v57  ;;  %v4496_v0 = vld [vmem:[%s4869_s9 + $0x244] ss:$28 sps:$4 sm:$0xff]   ;;  %v4564_v57 = vld [vmem:[%s4869_s9 + $0x310] ss:$28 sps:$4 sm:$0xff]  }
  0x99   : > { %3989 = vmatpush1.bf16.msra.mxu1 %v4918_v20  ;;  %v4418_v20 = vld [vmem:[%s4869_s9 + $0x84] ss:$28 sps:$4 sm:$0xff]  }
  0x9a   : > { %3974 = vmatprep.subr.bf16.mxu1 %v4924_v21  ;;  %v4467_v21 = vld [vmem:[%s6098_s1 + $0x334] ss:$8 sps:$4 sm:$0xff]  }
  0x9b   : > { %1757 = vmatmul.mubr.bf16.gmra.mrb[20].mxu1 %v4519_v16  ;;  %v4526_v16 = vld [vmem:[%s4869_s9 + $0x324] ss:$28 sps:$4 sm:$0xff]  }
  0x9c   : > { %1766 = vmatprep.mubr.bf16.mxu1 %v4523_v17  ;;  %v4580_v17 = vld [vmem:[%s4869_s9 + $0x318] ss:$28 sps:$4 sm:$0xff]  }
  0x9d   : > { %3990 = vmatpush1.bf16.msra.mxu1 %v4930_v22  ;;  %v4465_v22 = vld [vmem:[%s6098_s1 + $0x330] ss:$8 sps:$4 sm:$0xff]  }
  0x9e   : > { %2000 = vmatmul.mubr.bf16.gmra.mrb[40].mxu0 %v4384_v3  ;;  %3975 = vmatprep.subr.bf16.mxu1 %v4936_v23  ;;  %v4486_v23 = vld [vmem:[%s6098_s1 + $0x344] ss:$8 sps:$4 sm:$0xff]   ;;  %v4505_v3 = vld [vmem:[%s4869_s9 + $0x27c] ss:$28 sps:$4 sm:$0xff]  }
  0x9f   : > { %2009 = vmatprep.mubr.bf16.mxu0 %v4388_v4  ;;  %v4568_v4 = vld [vmem:[%s4869_s9 + $0x348] ss:$28 sps:$4 sm:$0xff]  }
  0xa1   : > { %3991 = vmatpush1.bf16.msra.mxu1 %v4942_v24  ;;  %v4430_v24 = vld [vmem:[%s4869_s9 + $0xbc] ss:$28 sps:$4 sm:$0xff]  }
  0xa2   : > { %3976 = vmatprep.subr.bf16.mxu1 %v4948_v25  ;;  %v4501_v25 = vld [vmem:[%s6098_s1 + $0x354] ss:$8 sps:$4 sm:$0xff]  }
  0xa3   : > { %1767 = vmatmul.mubr.bf16.gmra.mrb[24].mxu1 %v4525_v60  ;;  %v4591_v60 = vld [vmem:[%s6100_s3] sm:$0xff]  }
  0xa4   : > { %1776 = vmatprep.mubr.bf16.mxu1 %v4532_v61  ;;  %v4744_v61 = vmov 0  }
  0xa5   : > { %3992 = vmatpush1.bf16.msra.mxu1 %v4954_v26  ;;  %v4499_v26 = vld [vmem:[%s6098_s1 + $0x350] ss:$8 sps:$4 sm:$0xff]  }
  0xa6   : > { %2010 = vmatmul.mubr.bf16.gmra.mrb[44].mxu0 %v4390_v7  ;;  %3977 = vmatprep.subr.bf16.mxu1 %v4960_v27  ;;  %v4516_v27 = vld [vmem:[%s6098_s1 + $0x364] ss:$8 sps:$4 sm:$0xff]   ;;  %v4511_v7 = vld [vmem:[%s4869_s9 + $0x2b4] ss:$28 sps:$4 sm:$0xff]  }
  0xa7   : > { %2092 = vmatprep.mubr.bf16.mxu0 %v4399_v8  ;;  %v4570_v8 = vld [vmem:[%s4869_s9 + $0x2a8] ss:$28 sps:$4 sm:$0xff]  }
  0xa9   : > { %3993 = vmatpush1.bf16.msra.mxu1 %v4966_v28  ;;  %v4439_v28 = vld [vmem:[%s4869_s9 + $0xf4] ss:$28 sps:$4 sm:$0xff]  }
  0xaa   : > { %3978 = vmatprep.subr.bf16.mxu1 %v4972_v29  ;;  %v4531_v29 = vld [vmem:[%s6098_s1 + $0x374] ss:$8 sps:$4 sm:$0xff]  }
  0xab   : > { %1777 = vmatmul.mubr.bf16.gmra.mrb[28].mxu1 %v4534_v13  ;;  %v4597_v13 = vld [vmem:[%s6100_s3 + $0x18] sm:$0xff]  }
  0xac   : > { %1786 = vmatprep.mubr.bf16.mxu1 %v4538_v33  ;;  %v4545_v33 = vld [vmem:[%s4869_s9 + $0x50] ss:$28 sps:$4 sm:$0xff]  }
  0xad   : > { %3994 = vmatpush1.bf16.msra.mxu1 %v4978_v30  ;;  %v4542_v30 = vld [vmem:[%s4869_s9 + $0x1fc] ss:$28 sps:$4 sm:$0xff]  }
  0xae   : > { %2093 = vmatmul.mubr.bf16.vlgmr.msra.gmra.mrb[0].mxu0 %v4397_v11  ;;  %3979 = vmatprep.subr.bf16.mxu1 %v4984_v31  ;;  %v4529_v31 = vld [vmem:[%s6098_s1 + $0x370] ss:$8 sps:$4 sm:$0xff]   ;;  %v4520_v11 = vld [vmem:[%s4869_s9 + $0x2ec] ss:$28 sps:$4 sm:$0xff]  }
  0xaf   : > { %2254 = vmatpush1.bf16.msra.mxu0 %v4402_v12  ;;  %2102 = vmatprep.mubr.bf16.mxu0 %v4409_v14  ;;  %v4576_v12 = vld [vmem:[%s4869_s9 + $0x2e0] ss:$28 sps:$4 sm:$0xff]  }
  0xb0   : > { %2255 = vmatprep.subr.bf16.mxu0 %v4425_v15  ;;  %v4578_v14 = vld [vmem:[%s4869_s9 + $0x31c] ss:$28 sps:$4 sm:$0xff]   ;;  %v4522_v15 = vld [vmem:[%s4869_s9 + $0x2e8] ss:$28 sps:$4 sm:$0xff]  }
  0xb1   : > { %3995 = vmatpush1.bf16.msra.mxu1 %v4989_v32  ;;  %v4546_v32 = vld [vmem:[%s4869_s9 + $0x234] ss:$28 sps:$4 sm:$0xff]  }
  0xb3   : > { %2256 = vmatpush1.bf16.msra.mxu0 %v4423_v18  ;;  %1787 = vmatmul.mubr.bf16.gmra.mrb[32].mxu1 %v4540_v36  ;;  %v4582_v18 = vld [vmem:[%s4869_s9 + $0x354] ss:$28 sps:$4 sm:$0xff]  }
  0xb4   : > { %2257 = vmatprep.subr.bf16.mxu0 %v4446_v19  ;;  %1796 = vmatprep.mubr.bf16.mxu1 %v4542_v30  ;;  %v4528_v19 = vld [vmem:[%s4869_s9 + $0x320] ss:$28 sps:$4 sm:$0xff]   ;;  %v4561_v36 = vld [vmem:[%s4869_s9 + $0x130] ss:$28 sps:$4 sm:$0xff]   ;;  %v4565_v30 = vld [vmem:[%s4869_s9 + $0x168] ss:$28 sps:$4 sm:$0xff]  }
  0xb6   : > { %2103 = vmatmul.mubr.bf16.gmra.mrb[4].mxu0 %v4413_v58  ;;  %v4535_v58 = vld [vmem:[%s4869_s9 + $0x35c] ss:$28 sps:$4 sm:$0xff]  }
  0xb7   : > { %2112 = vmatprep.mubr.bf16.mxu0 %v4418_v20  ;;  %2258 = vmatpush1.bf16.msra.mxu0 %v4444_v59  ;;  %v4584_v20 = vld [vmem:[%s4869_s9 + $0x350] ss:$28 sps:$4 sm:$0xff]   ;;  %v4537_v59 = vld [vmem:[%s4869_s9 + $0x358] ss:$28 sps:$4 sm:$0xff]  }
  0xb8   : > { %2259 = vmatprep.subr.bf16.mxu0 %v4467_v21  ;;  %v4590_v21 = vld [vmem:[%s6100_s3 + $0x40] sm:$0xff]  }
  0xb9   : > { %3798 = vmatprep.subr.bf16.mxu1 %v4590_v21 }
  0xbb   : > { %2260 = vmatpush1.bf16.msra.mxu0 %v4465_v22  ;;  %1797 = vmatmul.mubr.bf16.gmra.mrb[36].mxu1 %v4544_v39  ;;  %v4592_v22 = vld [vmem:[%s6100_s3 + $0x48] sm:$0xff]  }
  0xbc   : > { %2261 = vmatprep.subr.bf16.mxu0 %v4486_v23  ;;  %1806 = vmatprep.mubr.bf16.mxu1 %v4546_v32  ;;  %v4593_v23 = vld [vmem:[%s6100_s3 + $0x8] sm:$0xff]   ;;  %v4569_v32 = vld [vmem:[%s4869_s9 + $0x1a0] ss:$28 sps:$4 sm:$0xff]  }
  0xbe   : > { %2113 = vmatmul.mubr.bf16.gmra.mrb[8].mxu0 %v4422_v62  ;;  %v4541_v62 = vld [vmem:[%s4869_s9 + $0x18] ss:$28 sps:$4 sm:$0xff]  }
  0xbf   : > { %2122 = vmatprep.mubr.bf16.mxu0 %v4430_v24  ;;  %2262 = vmatpush1.bf16.msra.mxu0 %v4484_v63  ;;  %v4594_v24 = vld [vmem:[%s6100_s3 + $0x50] sm:$0xff]  }
  0xc0   : > { %2263 = vmatprep.subr.bf16.mxu0 %v4501_v25  ;;  %v4595_v63 = vld [vmem:[%s6100_s3 + $0x10] sm:$0xff]   ;;  %v4596_v25 = vld [vmem:[%s6100_s3 + $0x58] sm:$0xff]  }
  0xc3   : > { %2264 = vmatpush1.bf16.msra.mxu0 %v4499_v26  ;;  %1807 = vmatmul.mubr.bf16.gmra.mrb[40].mxu1 %v4548_v42  ;;  %v4598_v26 = vld [vmem:[%s6100_s3 + $0x60] sm:$0xff]  }
  0xc4   : > { %2265 = vmatprep.subr.bf16.mxu0 %v4516_v27  ;;  %1816 = vmatprep.mubr.bf16.mxu1 %v4550_v43  ;;  %v4599_v27 = vld [vmem:[%s6100_s3 + $0x20] sm:$0xff]  }
  0xc6   : > { %2123 = vmatmul.mubr.bf16.gmra.mrb[12].mxu0 %v4434_v34  ;;  %v4600_v34 = vld [vmem:[%s6100_s3 + $0x68] sm:$0xff]  }
  0xc7   : > { %2132 = vmatprep.mubr.bf16.mxu0 %v4439_v28  ;;  %2266 = vmatpush1.bf16.msra.mxu0 %v4514_v35  ;;  %v4549_v28 = vld [vmem:[%s4869_s9 + $0x88] ss:$28 sps:$4 sm:$0xff]   ;;  %v4553_v35 = vld [vmem:[%s4869_s9 + $0xc0] ss:$28 sps:$4 sm:$0xff]  }
  0xc8   : > { %2267 = vmatprep.subr.bf16.mxu0 %v4531_v29  ;;  %v4557_v29 = vld [vmem:[%s4869_s9 + $0xf8] ss:$28 sps:$4 sm:$0xff]  }
  0xcb   : > { %2268 = vmatpush1.bf16.msra.mxu0 %v4529_v31  ;;  %1817 = vmatmul.mubr.bf16.gmra.mrb[44].mxu1 %v4552_v46 }
  0xcc   : > { %1826 = vmatprep.mubr.bf16.mxu1 %v4554_v47 }
  0xce   : > { %2133 = vmatmul.mubr.bf16.gmra.mrb[16].mxu0 %v4443_v37 }
  0xcf   : > { %2142 = vmatprep.mubr.bf16.mxu0 %v4451_v38 }
  0xd3   : > { %1827 = vmatmul.mubr.bf16.gmra.mrb[48].mxu1 %v4556_v50 }
  0xd4   : > { %1836 = vmatprep.mubr.bf16.mxu1 %v4558_v51 }
  0xd6   : > { %2143 = vmatmul.mubr.bf16.gmra.mrb[20].mxu0 %v4455_v40 }
  0xd7   : > { %2152 = vmatprep.mubr.bf16.mxu0 %v4460_v41 }
  0xdb   : > { %1837 = vmatmul.mubr.bf16.gmra.mrb[52].mxu1 %v4560_v54  ;;  %v4581_v54 = vld [vmem:[%s4869_s9 + $0x248] ss:$28 sps:$4 sm:$0xff]  }
  0xdc   : > { %1846 = vmatprep.mubr.bf16.mxu1 %v4562_v55 }
  0xde   : > { %2153 = vmatmul.mubr.bf16.gmra.mrb[24].mxu0 %v4464_v44  ;;  %v4573_v44 = vld [vmem:[%s4869_s9 + $0x1d8] ss:$28 sps:$4 sm:$0xff]  }
  0xdf   : > { %2162 = vmatprep.mubr.bf16.mxu0 %v4472_v45 }
  0xe3   : > { %1847 = vmatmul.mubr.bf16.gmra.mrb[56].mxu1 %v4564_v57 }
  0xe4   : > { %1856 = vmatprep.mubr.bf16.mxu1 %v4566_v1  ;;  %v4601_v1 = vld [vmem:[%s6100_s3 + $0x28] sm:$0xff]  }
  0xe6   : > { %2163 = vmatmul.mubr.bf16.gmra.mrb[28].mxu0 %v4476_v48 }
  0xe7   : > { %2172 = vmatprep.mubr.bf16.mxu0 %v4481_v49  ;;  %v4577_v49 = vld [vmem:[%s4869_s9 + $0x210] ss:$28 sps:$4 sm:$0xff]  }
  0xeb   : > { %1857 = vmatmul.mubr.bf16.gmra.mrb[60].mxu1 %v4568_v4  ;;  %v4603_v4 = vld [vmem:[%s6100_s3 + $0x30] sm:$0xff]  }
  0xec   : > { %2019 = vmatprep.mubr.bf16.mxu1 %v4572_v5 }
  0xee   : > { %2173 = vmatmul.mubr.bf16.gmra.mrb[32].mxu0 %v4483_v52 }
  0xef   : > { %2182 = vmatprep.mubr.bf16.mxu0 %v4490_v53 }
  0xf3   : > { %2020 = vmatmul.mubr.bf16.vlgmr.msra.gmra.mrb[48].mxu1 %v4570_v8  ;;  %v4604_v8 = vld [vmem:[%s6100_s3 + $0x78] sm:$0xff]  }
  0xf4   : > { %2029 = vmatprep.mubr.bf16.mxu1 %v4574_v9  ;;  %3799 = vmatpush3.bf16.msra.mxu1 %v4591_v60 }
  0xf5   : > { %3800 = vmatprep.subr.bf16.mxu1 %v4592_v22 }
  0xf6   : > { %2183 = vmatmul.mubr.bf16.gmra.mrb[36].mxu0 %v4492_v56 }
  0xf7   : > { %2192 = vmatprep.mubr.bf16.mxu0 %v4496_v0 }
  0xf8   : > { %3801 = vmatpush3.bf16.msra.mxu1 %v4593_v23 }
  0xf9   : > { %3802 = vmatprep.subr.bf16.mxu1 %v4594_v24 }
  0xfb   : > { %2030 = vmatmul.mubr.bf16.gmra.mrb[52].mxu1 %v4576_v12 }
  0xfc   : > { %2039 = vmatprep.mubr.bf16.mxu1 %v4578_v14  ;;  %3803 = vmatpush3.bf16.msra.mxu1 %v4595_v63 }
  0xfd   : > { %3804 = vmatprep.subr.bf16.mxu1 %v4596_v25 }
  0xfe   : > { %2193 = vmatmul.mubr.bf16.gmra.mrb[40].mxu0 %v4498_v2  ;;  %v4585_v2 = vld [vmem:[%s4869_s9 + $0x280] ss:$28 sps:$4 sm:$0xff]  }
  0xff   : > { %2202 = vmatprep.mubr.bf16.mxu0 %v4505_v3  ;;  %v4602_v3 = vld [vmem:[%s6100_s3 + $0x70] sm:$0xff]  }
 0x100   : > { %3805 = vmatpush3.bf16.msra.mxu1 %v4597_v13 }
 0x101   : > { %3806 = vmatprep.subr.bf16.mxu1 %v4598_v26 }
 0x103   : > { %2040 = vmatmul.mubr.bf16.gmra.mrb[56].mxu1 %v4580_v17  ;;  %v4587_v17 = vld [vmem:[%s4869_s9 + $0x2f0] ss:$28 sps:$4 sm:$0xff]  }
 0x104   : > { %2049 = vmatprep.mubr.bf16.mxu1 %v4582_v18  ;;  %3807 = vmatpush3.bf16.msra.mxu1 %v4599_v27 }
 0x105   : > { %3808 = vmatprep.subr.bf16.mxu1 %v4600_v34 }
 0x106   : > { %2203 = vmatmul.mubr.bf16.gmra.mrb[44].mxu0 %v4507_v6 }
 0x107   : > { %2212 = vmatprep.mubr.bf16.mxu0 %v4511_v7 }
 0x108   : > { %3809 = vmatpush3.bf16.msra.mxu1 %v4601_v1 }
 0x109   : > { %3810 = vmatprep.subr.bf16.mxu1 %v4602_v3 }
 0x10b   : > { %2050 = vmatmul.mubr.bf16.gmra.mrb[60].mxu1 %v4584_v20 }
 0x10c   : > { %3811 = vmatpush3.bf16.msra.mxu1 %v4603_v4 }
 0x10d   : > { %3812 = vmatprep.subr.bf16.mxu1 %v4604_v8 }
 0x10e   : > { %2213 = vmatmul.mubr.bf16.gmra.mrb[48].mxu0 %v4513_v10  ;;  %v4605_v10 = vld [vmem:[%s6100_s3 + $0x38] sm:$0xff]  }
 0x10f   : > { %2222 = vmatprep.mubr.bf16.mxu0 %v4520_v11  ;;  %v4586_v11 = vld [vmem:[%s4869_s9 + $0x2b8] ss:$28 sps:$4 sm:$0xff]  }
 0x110   : > { %3813 = vmatpush3.bf16.msra.mxu1 %v4605_v10 }
 0x116   : > { %2223 = vmatmul.mubr.bf16.gmra.mrb[52].mxu0 %v4522_v15 }
 0x117   : > { %2232 = vmatprep.mubr.bf16.mxu0 %v4526_v16 }
 0x11e   : > { %2233 = vmatmul.mubr.bf16.gmra.mrb[56].mxu0 %v4528_v19 }
 0x11f   : > { %2242 = vmatprep.mubr.bf16.mxu0 %v4535_v58 }
 0x126   : > { %2243 = vmatmul.mubr.bf16.gmra.mrb[60].mxu0 %v4537_v59  ;;  %v4588_v59 = vld [vmem:[%s4869_s9 + $0x328] ss:$28 sps:$4 sm:$0xff]  }
 0x127   : > { %2285 = vmatprep.mubr.bf16.mxu0 %v4744_v61 }
 0x12e   : > { %2286 = vmatmul.mubr.bf16.vlgmr.msra.gmra.mrb[0].mxu0 %v4541_v62  ;;  %v4589_v62 = vld [vmem:[%s4869_s9 + $0x360] ss:$28 sps:$4 sm:$0xff]  }
 0x12f   : > { %2295 = vmatprep.mubr.bf16.mxu0 %v4744_v61 }
 0x136   : > { %2296 = vmatmul.mubr.bf16.gmra.mrb[4].mxu0 %v4545_v33 }
 0x137   : > { %2305 = vmatprep.mubr.bf16.mxu0 %v4744_v61 }
 0x13e   : > { %2306 = vmatmul.mubr.bf16.gmra.mrb[8].mxu0 %v4549_v28 }
 0x13f   : > { %2315 = vmatprep.mubr.bf16.mxu0 %v4744_v61 }
 0x146   : > { %2316 = vmatmul.mubr.bf16.gmra.mrb[12].mxu0 %v4553_v35  ;;  %v5408_v31 = vpop.f32.mrb[0].mxu1 }
 0x147   : > { %2325 = vmatprep.mubr.bf16.mxu0 %v4744_v61  ;;  %v5410_v37 = vpop.f32.mrb[1].mxu1 }
 0x148   : > { %v5412_v38 = vpop.f32.mrb[2].mxu1 }
 0x149   : > { %v5415_v39 = vpop.f32.mrb[3].mxu1 }
 0x14e   : > { %2326 = vmatmul.mubr.bf16.gmra.mrb[16].mxu0 %v4557_v29  ;;  %v5418_v40 = vpop.f32.mrb[4].mxu1 }
 0x14f   : > { %2335 = vmatprep.mubr.bf16.mxu0 %v4744_v61  ;;  %v5420_v41 = vpop.f32.mrb[5].mxu1 }
 0x150   : > { %v5422_v42 = vpop.f32.mrb[6].mxu1 }
 0x151   : > { %v5425_v43 = vpop.f32.mrb[7].mxu1 }
 0x156   : > { %2336 = vmatmul.mubr.bf16.gmra.mrb[20].mxu0 %v4561_v36  ;;  %v5428_v45 = vpop.f32.mrb[8].mxu1 }
 0x157   : > { %2345 = vmatprep.mubr.bf16.mxu0 %v4744_v61  ;;  %v5430_v46 = vpop.f32.mrb[9].mxu1 }
 0x158   : > { %v5432_v47 = vpop.f32.mrb[10].mxu1 }
 0x159   : > { %v5435_v48 = vpop.f32.mrb[11].mxu1 }
 0x15e   : > { %2346 = vmatmul.mubr.bf16.gmra.mrb[24].mxu0 %v4565_v30  ;;  %v5438_v50 = vpop.f32.mrb[12].mxu1 }
 0x15f   : > { %2355 = vmatprep.mubr.bf16.mxu0 %v4744_v61  ;;  %v5440_v51 = vpop.f32.mrb[13].mxu1 }
 0x160   : > { %v5442_v52 = vpop.f32.mrb[14].mxu1 }
 0x161   : > { %v5445_v53 = vpop.f32.mrb[15].mxu1 }
 0x166   : > { %2356 = vmatmul.mubr.bf16.gmra.mrb[28].mxu0 %v4569_v32  ;;  %v5448_v55 = vpop.f32.mrb[16].mxu1 }
 0x167   : > { %2365 = vmatprep.mubr.bf16.mxu0 %v4744_v61  ;;  %v5450_v56 = vpop.f32.mrb[17].mxu1 }
 0x168   : > { %v5452_v0 = vpop.f32.mrb[18].mxu1 }
 0x169   : > { %v5455_v57 = vpop.f32.mrb[19].mxu1 }
 0x16e   : > { %2366 = vmatmul.mubr.bf16.gmra.mrb[32].mxu0 %v4573_v44  ;;  %v5467_v5 = vpop.f32.mrb[20].mxu1 }
 0x16f   : > { %2375 = vmatprep.mubr.bf16.mxu0 %v4744_v61  ;;  %v5469_v6 = vpop.f32.mrb[21].mxu1 }
 0x170   : > { %v5471_v7 = vpop.f32.mrb[22].mxu1 }
 0x171   : > { %v5477_v9 = vpop.f32.mrb[23].mxu1 }
 0x176   : > { %2376 = vmatmul.mubr.bf16.gmra.mrb[36].mxu0 %v4577_v49  ;;  %v5483_v12 = vpop.f32.mrb[24].mxu1 }
 0x177   : > { %2385 = vmatprep.mubr.bf16.mxu0 %v4744_v61  ;;  %v5485_v14 = vpop.f32.mrb[25].mxu1 }
 0x178   : > { %v5487_v15 = vpop.f32.mrb[26].mxu1 }
 0x179   : > { %v5490_v16 = vpop.f32.mrb[27].mxu1 }
 0x17e   : > { %2386 = vmatmul.mubr.bf16.gmra.mrb[40].mxu0 %v4581_v54  ;;  %v5493_v18 = vpop.f32.mrb[28].mxu1 }
 0x17f   : > { %2395 = vmatprep.mubr.bf16.mxu0 %v4744_v61  ;;  %v5495_v19 = vpop.f32.mrb[29].mxu1 }
 0x180   : > { %v5497_v58 = vpop.f32.mrb[30].mxu1 }
 0x181   : > { %v5500_v20 = vpop.f32.mrb[31].mxu1 }
 0x186   : > { %2396 = vmatmul.mubr.bf16.gmra.mrb[44].mxu0 %v4585_v2  ;;  %v5503_v21 = vpop.f32.mrb[32].mxu1 }
 0x187   : > { %2405 = vmatprep.mubr.bf16.mxu0 %v4744_v61  ;;  %v5505_v60 = vpop.f32.mrb[33].mxu1 }
 0x188   : > { %v5507_v22 = vpop.f32.mrb[34].mxu1 }
 0x189   : > { %v5510_v23 = vpop.f32.mrb[35].mxu1 }
 0x18e   : > { %2406 = vmatmul.mubr.bf16.gmra.mrb[48].mxu0 %v4586_v11  ;;  %v5513_v24 = vpop.f32.mrb[36].mxu1  ;;  %v528_v11 = vlaneseq }
 0x18f   : > { %2415 = vmatprep.mubr.bf16.mxu0 %v4744_v61  ;;  %v5515_v63 = vpop.f32.mrb[37].mxu1 }
 0x190   : > { %v5517_v25 = vpop.f32.mrb[38].mxu1 }
 0x191   : > { %v5519_v13 = vpop.f32.mrb[39].mxu1 }
 0x196   : > { %2416 = vmatmul.mubr.bf16.gmra.mrb[52].mxu0 %v4587_v17  ;;  %v5521_v33 = vpop.f32.mrb[40].mxu1  ;;  %v529_v17 = vshrl.u32 %v528_v11, 7 }
 0x197   : > { %2425 = vmatprep.mubr.bf16.mxu0 %v4744_v61  ;;  %v5523_v26 = vpop.f32.mrb[41].mxu1 }
 0x198   : > { %v5525_v27 = vpop.f32.mrb[42].mxu1 }
 0x199   : > { %v5527_v34 = vpop.f32.mrb[43].mxu1 }
 0x19e   : > { %2426 = vmatmul.mubr.bf16.gmra.mrb[56].mxu0 %v4588_v59 }
 0x19f   : > { %2435 = vmatprep.mubr.bf16.mxu0 %v4744_v61  ;;  %v5529_v61 = vpop.f32.mrb[44].mxu1 }
 0x1a0   : > { %v5531_v28 = vpop.f32.mrb[45].mxu1 }
 0x1a1   : > { %v5533_v35 = vpop.f32.mrb[46].mxu1 }
 0x1a2   : > { %v5535_v29 = vpop.f32.mrb[47].mxu1 }
 0x1a3   : > { %6105 = vst [vmem:[#allocation2_spill] sm:$0xff] %v5535_v29 }
 0x1a6   : > { %2436 = vmatmul.mubr.bf16.gmra.mrb[60].mxu0 %v4589_v62 }
 0x1c6   : > { %v5537_v36 = vpop.f32.mrb[48].mxu1 }
 0x1c7   : > { %6106 = vst [vmem:[#allocation3_spill] sm:$0xff] %v5537_v36  ;;  %v5539_v30 = vpop.f32.mrb[49].mxu1 }
 0x1c8   : > { %6107 = vst [vmem:[#allocation4_spill] sm:$0xff] %v5539_v30  ;;  %v5541_v32 = vpop.f32.mrb[50].mxu1 }
 0x1c9   : > { %6108 = vst [vmem:[#allocation5_spill] sm:$0xff] %v5541_v32  ;;  %v5543_v44 = vpop.f32.mrb[51].mxu1 }
 0x1ca   : > { %6109 = vst [vmem:[#allocation6_spill] sm:$0xff] %v5543_v44 }
 0x1ce   : > { %v5545_v49 = vpop.f32.mrb[52].mxu1 }
 0x1cf   : > { %6110 = vst [vmem:[#allocation7_spill] sm:$0xff] %v5545_v49  ;;  %v5547_v54 = vpop.f32.mrb[53].mxu1 }
 0x1d0   : > { %6111 = vst [vmem:[#allocation8_spill] sm:$0xff] %v5547_v54  ;;  %v5549_v1 = vpop.f32.mrb[54].mxu1 }
 0x1d1   : > { %6112 = vst [vmem:[#allocation9_spill] sm:$0xff] %v5549_v1  ;;  %v5551_v2 = vpop.f32.mrb[55].mxu1  ;;  %v530_v1 = vsub.s32 0, %v529_v17 }
 0x1d2   : > { %6113 = vst [vmem:[#allocation10_spill] sm:$0xff] %v5551_v2 }
 0x1d6   : > { %v5553_v3 = vpop.f32.mrb[56].mxu1 }
 0x1d7   : > { %6114 = vst [vmem:[#allocation11_spill] sm:$0xff] %v5553_v3  ;;  %v5555_v4 = vpop.f32.mrb[57].mxu1  ;;  %v526_v3 = vld [vmem:[%s6099_s2] sm:$0x3] }
 0x1d8   : > { %6115 = vst [vmem:[#allocation12_spill] sm:$0xff] %v5555_v4  ;;  %v5557_v8 = vpop.f32.mrb[58].mxu1  ;;  %v534_v4 = vsub.s32 1, %v529_v17  ;;  %v5572_v2 = vrot.slane %v526_v3, %v530_v1 }
 0x1d9   : > { %6116 = vst [vmem:[#allocation13_spill] sm:$0xff] %v5557_v8  ;;  %v5559_v10 = vpop.f32.mrb[59].mxu1 }
 0x1da   : > { %6117 = vst [vmem:[#allocation14_spill] sm:$0xff] %v5559_v10  ;;  %v5574_v8 = vrot.slane %v526_v3, %v534_v4  ;;  %v1709_v11 = vadd.f32 %v5408_v31, %v5572_v2  ;;  %v4606_v31 = vld [vmem:[%s6102_s5] sm:$0xff]  }
 0x1db   : > { %3928 = vmatprep.subr.bf16.mxu1 %v4606_v31 }
 0x1dc   : > { %v1715_v44 = vadd.f32 %v5415_v39, %v5574_v8  ;;  %v1721_v39 = vadd.f32 %v5420_v41, %v5574_v8 }
 0x1de   : > { %v5561_v59 = vpop.f32.mrb[60].mxu1 }
 0x1df   : > { %6118 = vst [vmem:[#allocation15_spill] sm:$0xff] %v5561_v59  ;;  %v5563_v62 = vpop.f32.mrb[61].mxu1 }
 0x1e0   : > { %6119 = vst [vmem:[#allocation16_spill] sm:$0xff] %v5563_v62  ;;  %v5565_v49 = vpop.f32.mrb[62].mxu1  ;;  %v1711_v62 = vadd.f32 %v5410_v37, %v5574_v8 }
 0x1e1   : > { %6120 = vst [vmem:[#allocation17_spill] sm:$0xff] %v5565_v49  ;;  %v5567_v54 = vpop.f32.mrb[63].mxu1 }
 0x1e2   : > { %6121 = vst [vmem:[#allocation18_spill] sm:$0xff] %v5567_v54  ;;  %v1713_v54 = vadd.f32 %v5412_v38, %v5572_v2  ;;  %v1719_v38 = vadd.f32 %v5418_v40, %v5572_v2 }
 0x201   : > { %v2287_v59 = vpop.f32.mrb[0].mxu0 }
 0x202   : > { %v3997_v49 = vadd.f32 %v2287_v59, %v1709_v11  ;;  %v2289_v10 = vpop.f32.mrb[1].mxu0 }
 0x203   : > { %v3999_v17 = vadd.f32 %v2289_v10, %v1711_v62  ;;  %v2291_v1 = vpop.f32.mrb[2].mxu0  ;;  %v1723_v62 = vadd.f32 %v5422_v42, %v5572_v2  ;;  %v1729_v42 = vadd.f32 %v5428_v45, %v5572_v2 }
 0x204   : > { %v4001_v32 = vadd.f32 %v2291_v1, %v1713_v54  ;;  %v2293_v3 = vpop.f32.mrb[3].mxu0  ;;  %v2446_v30 = vmax.f32 %v3997_v49, 0.0 }
 0x205   : > { %v4003_v4 = vadd.f32 %v2293_v3, %v1715_v44  ;;  %v2447_v36 = vmax.f32 %v3999_v17, 0.0 }
 0x206   : > { %v2448_v37 = vmax.f32 %v4001_v32, 0.0  ;;  %v1725_v32 = vadd.f32 %v5425_v43, %v5574_v8 }
 0x207   : > { %v2449_v29 = vmax.f32 %v4003_v4, 0.0 }
 0x208   : > { %v2510_v59 = vpack.c.bf16 %v2448_v37, %v2446_v30  ;;  %v1731_v37 = vadd.f32 %v5430_v46, %v5574_v8 }
 0x209   : > { %v2511_v10 = vpack.c.bf16 %v2449_v29, %v2447_v36  ;;  %v2297_v54 = vpop.f32.mrb[4].mxu0 }
 0x20a   : > { %v4005_v11 = vadd.f32 %v2297_v54, %v1719_v38  ;;  %v2299_v1 = vpop.f32.mrb[5].mxu0 }
 0x20b   : > { %v4007_v44 = vadd.f32 %v2299_v1, %v1721_v39  ;;  %v2301_v49 = vpop.f32.mrb[6].mxu0  ;;  %2709 = vmatprep.mubr.bf16.mxu1 %v2511_v10  ;;  %v1733_v39 = vadd.f32 %v5432_v47, %v5572_v2 }
 0x20c   : > { %v4009_v17 = vadd.f32 %v2301_v49, %v1723_v62  ;;  %v2303_v3 = vpop.f32.mrb[7].mxu0  ;;  %2710 = vmatmul.mubr.bf16.vlgmr.msra.gmra.mrb[64].mxu1 %v2510_v59  ;;  %v2450_v30 = vmax.f32 %v4005_v11, 0.0 }
 0x20d   : > { %v4011_v40 = vadd.f32 %v2303_v3, %v1725_v32  ;;  %3929 = vmatpush3.bf16.msra.mxu1 %v4606_v31  ;;  %v2451_v29 = vmax.f32 %v4007_v44, 0.0  ;;  %v1735_v31 = vadd.f32 %v5435_v48, %v5574_v8  ;;  %v1741_v3 = vadd.f32 %v5440_v51, %v5574_v8 }
 0x20e   : > { %v2452_v41 = vmax.f32 %v4009_v17, 0.0  ;;  %v1739_v17 = vadd.f32 %v5438_v50, %v5572_v2 }
 0x20f   : > { %v2453_v36 = vmax.f32 %v4011_v40, 0.0 }
 0x210   : > { %v2512_v4 = vpack.c.bf16 %v2452_v41, %v2450_v30  ;;  %v1743_v30 = vadd.f32 %v5442_v52, %v5572_v2 }
 0x211   : > { %v2513_v43 = vpack.c.bf16 %v2453_v36, %v2451_v29  ;;  %v2307_v38 = vpop.f32.mrb[8].mxu0  ;;  %v1745_v36 = vadd.f32 %v5445_v53, %v5574_v8 }
 0x212   : > { %v4013_v10 = vadd.f32 %v2307_v38, %v1729_v42  ;;  %v2309_v59 = vpop.f32.mrb[9].mxu0 }
 0x213   : > { %v4015_v54 = vadd.f32 %v2309_v59, %v1731_v37  ;;  %v2311_v62 = vpop.f32.mrb[10].mxu0  ;;  %2717 = vmatprep.mubr.bf16.mxu1 %v2513_v43  ;;  %v1749_v59 = vadd.f32 %v5448_v55, %v5572_v2 }
 0x214   : > { %v4017_v11 = vadd.f32 %v2311_v62, %v1733_v39  ;;  %v2313_v1 = vpop.f32.mrb[11].mxu0  ;;  %2718 = vmatmul.mubr.bf16.gmra.mrb[68].mxu1 %v2512_v4  ;;  %v2454_v32 = vmax.f32 %v4013_v10, 0.0  ;;  %v1753_v62 = vadd.f32 %v5452_v0, %v5572_v2 }
 0x215   : > { %v4019_v45 = vadd.f32 %v2313_v1, %v1735_v31  ;;  %v2455_v46 = vmax.f32 %v4015_v54, 0.0  ;;  %v1751_v31 = vadd.f32 %v5450_v56, %v5574_v8 }
 0x216   : > { %v2456_v44 = vmax.f32 %v4017_v11, 0.0 }
 0x217   : > { %v2457_v49 = vmax.f32 %v4019_v45, 0.0  ;;  %v1755_v45 = vadd.f32 %v5455_v57, %v5574_v8 }
 0x218   : > { %v2514_v47 = vpack.c.bf16 %v2456_v44, %v2454_v32 }
 0x219   : > { %v2515_v40 = vpack.c.bf16 %v2457_v49, %v2455_v46  ;;  %v2317_v48 = vpop.f32.mrb[12].mxu0 }
 0x21a   : > { %v4021_v41 = vadd.f32 %v2317_v48, %v1739_v17  ;;  %v2319_v29 = vpop.f32.mrb[13].mxu0  ;;  %v1761_v48 = vadd.f32 %v5469_v6, %v5574_v8 }
 0x21b   : > { %v4023_v42 = vadd.f32 %v2319_v29, %v1741_v3  ;;  %v2321_v4 = vpop.f32.mrb[14].mxu0  ;;  %2725 = vmatprep.mubr.bf16.mxu1 %v2515_v40  ;;  %v1759_v40 = vadd.f32 %v5467_v5, %v5572_v2 }
 0x21c   : > { %v4025_v37 = vadd.f32 %v2321_v4, %v1743_v30  ;;  %v2323_v43 = vpop.f32.mrb[15].mxu0  ;;  %2726 = vmatmul.mubr.bf16.gmra.mrb[72].mxu1 %v2514_v47  ;;  %v2458_v38 = vmax.f32 %v4021_v41, 0.0  ;;  %v1763_v41 = vadd.f32 %v5471_v7, %v5572_v2 }
 0x21d   : > { %v4027_v50 = vadd.f32 %v2323_v43, %v1745_v36  ;;  %v2459_v51 = vmax.f32 %v4023_v42, 0.0  ;;  %v1765_v42 = vadd.f32 %v5477_v9, %v5574_v8 }
 0x21e   : > { %v2460_v39 = vmax.f32 %v4025_v37, 0.0 }
 0x21f   : > { %v2461_v10 = vmax.f32 %v4027_v50, 0.0 }
 0x220   : > { %v2516_v52 = vpack.c.bf16 %v2460_v39, %v2458_v38 }
 0x221   : > { %v2517_v54 = vpack.c.bf16 %v2461_v10, %v2459_v51  ;;  %v2327_v53 = vpop.f32.mrb[16].mxu0  ;;  %v1769_v10 = vadd.f32 %v5483_v12, %v5572_v2 }
 0x222   : > { %v4029_v11 = vadd.f32 %v2327_v53, %v1749_v59  ;;  %v2329_v1 = vpop.f32.mrb[17].mxu0  ;;  %v1771_v59 = vadd.f32 %v5485_v14, %v5574_v8 }
 0x223   : > { %v4031_v32 = vadd.f32 %v2329_v1, %v1751_v31  ;;  %v2331_v44 = vpop.f32.mrb[18].mxu0  ;;  %2733 = vmatprep.mubr.bf16.mxu1 %v2517_v54  ;;  %v1773_v31 = vadd.f32 %v5487_v15, %v5572_v2 }
 0x224   : > { %v4033_v46 = vadd.f32 %v2331_v44, %v1753_v62  ;;  %v2333_v49 = vpop.f32.mrb[19].mxu0  ;;  %2734 = vmatmul.mubr.bf16.gmra.mrb[76].mxu1 %v2516_v52  ;;  %v2462_v17 = vmax.f32 %v4029_v11, 0.0  ;;  %v1775_v62 = vadd.f32 %v5490_v16, %v5574_v8 }
 0x225   : > { %v4035_v55 = vadd.f32 %v2333_v49, %v1755_v45  ;;  %v2463_v56 = vmax.f32 %v4031_v32, 0.0 }
 0x226   : > { %v2464_v47 = vmax.f32 %v4033_v46, 0.0 }
 0x227   : > { %v2465_v3 = vmax.f32 %v4035_v55, 0.0  ;;  %v1779_v55 = vadd.f32 %v5493_v18, %v5572_v2 }
 0x228   : > { %v2518_v0 = vpack.c.bf16 %v2464_v47, %v2462_v17  ;;  %v1781_v17 = vadd.f32 %v5495_v19, %v5574_v8 }
 0x229   : > { %v2519_v30 = vpack.c.bf16 %v2465_v3, %v2463_v56  ;;  %v2337_v57 = vpop.f32.mrb[20].mxu0  ;;  %v1783_v56 = vadd.f32 %v5497_v58, %v5572_v2 }
 0x22a   : > { %v4037_v29 = vadd.f32 %v2337_v57, %v1759_v40  ;;  %v2339_v36 = vpop.f32.mrb[21].mxu0 }
 0x22b   : > { %v4039_v4 = vadd.f32 %v2339_v36, %v1761_v48  ;;  %v2341_v37 = vpop.f32.mrb[22].mxu0  ;;  %2741 = vmatprep.mubr.bf16.mxu1 %v2519_v30 }
 0x22c   : > { %v4041_v43 = vadd.f32 %v2341_v37, %v1763_v41  ;;  %v2343_v50 = vpop.f32.mrb[23].mxu0  ;;  %2742 = vmatmul.mubr.bf16.gmra.mrb[80].mxu1 %v2518_v0  ;;  %v2466_v38 = vmax.f32 %v4037_v29, 0.0  ;;  %v1785_v0 = vadd.f32 %v5500_v20, %v5574_v8  ;;  %v1791_v37 = vadd.f32 %v5505_v60, %v5574_v8 }
 0x22d   : > { %v4043_v5 = vadd.f32 %v2343_v50, %v1765_v42  ;;  %v2467_v6 = vmax.f32 %v4039_v4, 0.0  ;;  %v1789_v4 = vadd.f32 %v5503_v21, %v5572_v2  ;;  %v1793_v50 = vadd.f32 %v5507_v22, %v5572_v2 }
 0x22e   : > { %v2468_v39 = vmax.f32 %v4041_v43, 0.0 }
 0x22f   : > { %v2469_v51 = vmax.f32 %v4043_v5, 0.0 }
 0x230   : > { %v2520_v7 = vpack.c.bf16 %v2468_v39, %v2466_v38  ;;  %v1795_v39 = vadd.f32 %v5510_v23, %v5574_v8 }
 0x231   : > { %v2521_v52 = vpack.c.bf16 %v2469_v51, %v2467_v6  ;;  %v2347_v9 = vpop.f32.mrb[24].mxu0 }
 0x232   : > { %v4045_v54 = vadd.f32 %v2347_v9, %v1769_v10  ;;  %v2349_v53 = vpop.f32.mrb[25].mxu0 }
 0x233   : > { %v4047_v11 = vadd.f32 %v2349_v53, %v1771_v59  ;;  %v2351_v1 = vpop.f32.mrb[26].mxu0  ;;  %2749 = vmatprep.mubr.bf16.mxu1 %v2521_v52 }
 0x234   : > { %v4049_v45 = vadd.f32 %v2351_v1, %v1773_v31  ;;  %v2353_v32 = vpop.f32.mrb[27].mxu0  ;;  %2750 = vmatmul.mubr.bf16.gmra.mrb[84].mxu1 %v2520_v7  ;;  %v2470_v44 = vmax.f32 %v4045_v54, 0.0  ;;  %v1799_v31 = vadd.f32 %v5513_v24, %v5572_v2  ;;  %v1801_v54 = vadd.f32 %v5515_v63, %v5574_v8 }
 0x235   : > { %v4051_v12 = vadd.f32 %v2353_v32, %v1775_v62  ;;  %v2471_v14 = vmax.f32 %v4047_v11, 0.0  ;;  %v1803_v62 = vadd.f32 %v5517_v25, %v5572_v2 }
 0x236   : > { %v2472_v46 = vmax.f32 %v4049_v45, 0.0  ;;  %v1805_v45 = vadd.f32 %v5519_v13, %v5574_v8 }
 0x237   : > { %v2473_v49 = vmax.f32 %v4051_v12, 0.0 }
 0x238   : > { %v2522_v15 = vpack.c.bf16 %v2472_v46, %v2470_v44 }
 0x239   : > { %v2523_v47 = vpack.c.bf16 %v2473_v49, %v2471_v14  ;;  %v2357_v16 = vpop.f32.mrb[28].mxu0 }
 0x23a   : > { %v4053_v3 = vadd.f32 %v2357_v16, %v1779_v55  ;;  %v2359_v40 = vpop.f32.mrb[29].mxu0  ;;  %v1813_v16 = vadd.f32 %v5525_v27, %v5572_v2 }
 0x23b   : > { %v4055_v48 = vadd.f32 %v2359_v40, %v1781_v17  ;;  %v2361_v30 = vpop.f32.mrb[30].mxu0  ;;  %2757 = vmatprep.mubr.bf16.mxu1 %v2523_v47  ;;  %v1811_v17 = vadd.f32 %v5523_v26, %v5574_v8  ;;  %v1815_v40 = vadd.f32 %v5527_v34, %v5574_v8 }
 0x23c   : > { %v4057_v57 = vadd.f32 %v2361_v30, %v1783_v56  ;;  %v2363_v41 = vpop.f32.mrb[31].mxu0  ;;  %2758 = vmatmul.mubr.bf16.gmra.mrb[88].mxu1 %v2522_v15  ;;  %v2474_v29 = vmax.f32 %v4053_v3, 0.0  ;;  %v1809_v15 = vadd.f32 %v5521_v33, %v5572_v2 }
 0x23d   : > { %v4059_v18 = vadd.f32 %v2363_v41, %v1785_v0  ;;  %v2475_v19 = vmax.f32 %v4055_v48, 0.0 }
 0x23e   : > { %v2476_v36 = vmax.f32 %v4057_v57, 0.0 }
 0x23f   : > { %v2477_v42 = vmax.f32 %v4059_v18, 0.0 }
 0x240   : > { %v2524_v58 = vpack.c.bf16 %v2476_v36, %v2474_v29  ;;  %v1819_v36 = vadd.f32 %v5529_v61, %v5572_v2 }
 0x241   : > { %v2525_v43 = vpack.c.bf16 %v2477_v42, %v2475_v19  ;;  %v2367_v20 = vpop.f32.mrb[32].mxu0  ;;  %v1821_v19 = vadd.f32 %v5531_v28, %v5574_v8 }
 0x242   : > { %v4061_v5 = vadd.f32 %v2367_v20, %v1789_v4  ;;  %v2369_v38 = vpop.f32.mrb[33].mxu0  ;;  %v1823_v4 = vadd.f32 %v5533_v35, %v5572_v2 }
 0x243   : > { %v4063_v6 = vadd.f32 %v2369_v38, %v1791_v37  ;;  %v2371_v51 = vpop.f32.mrb[34].mxu0  ;;  %2765 = vmatprep.mubr.bf16.mxu1 %v2525_v43  ;;  %v6122_v43 = vld [vmem:[#allocation2_spill] sm:$0xff] }
 0x244   : > { %v4065_v10 = vadd.f32 %v2371_v51, %v1793_v50  ;;  %v2373_v7 = vpop.f32.mrb[35].mxu0  ;;  %2766 = vmatmul.mubr.bf16.gmra.mrb[92].mxu1 %v2524_v58  ;;  %v2478_v59 = vmax.f32 %v4061_v5, 0.0  ;;  %v1825_v20 = vadd.f32 %v6122_v43, %v5574_v8 }
 0x245   : > { %v4067_v21 = vadd.f32 %v2373_v7, %v1795_v39  ;;  %v2479_v60 = vmax.f32 %v4063_v6, 0.0  ;;  %v6123_v7 = vld [vmem:[#allocation3_spill] sm:$0xff] }
 0x246   : > { %v2480_v52 = vmax.f32 %v4065_v10, 0.0 }
 0x247   : > { %v2481_v9 = vmax.f32 %v4067_v21, 0.0  ;;  %v4092_v21 = vadd.f32 %v6123_v7, %v5572_v2 }
 0x248   : > { %v2526_v22 = vpack.c.bf16 %v2480_v52, %v2478_v59  ;;  %v6124_v59 = vld [vmem:[#allocation4_spill] sm:$0xff] }
 0x249   : > { %v2527_v53 = vpack.c.bf16 %v2481_v9, %v2479_v60  ;;  %v2377_v23 = vpop.f32.mrb[36].mxu0  ;;  %v4094_v52 = vadd.f32 %v6124_v59, %v5574_v8 }
 0x24a   : > { %v4069_v11 = vadd.f32 %v2377_v23, %v1799_v31  ;;  %v2379_v1 = vpop.f32.mrb[37].mxu0  ;;  %v6125_v31 = vld [vmem:[#allocation5_spill] sm:$0xff]  ;;  %v6126_v23 = vld [vmem:[#allocation6_spill] sm:$0xff] }
 0x24b   : > { %v4071_v32 = vadd.f32 %v2379_v1, %v1801_v54  ;;  %v2381_v12 = vpop.f32.mrb[38].mxu0  ;;  %2773 = vmatprep.mubr.bf16.mxu1 %v2527_v53 }
 0x24c   : > { %v4073_v44 = vadd.f32 %v2381_v12, %v1803_v62  ;;  %v2383_v46 = vpop.f32.mrb[39].mxu0  ;;  %2774 = vmatmul.mubr.bf16.gmra.mrb[96].mxu1 %v2526_v22  ;;  %v2482_v14 = vmax.f32 %v4069_v11, 0.0  ;;  %v4096_v22 = vadd.f32 %v6125_v31, %v5572_v2  ;;  %v4098_v62 = vadd.f32 %v6126_v23, %v5574_v8 }
 0x24d   : > { %v4075_v24 = vadd.f32 %v2383_v46, %v1805_v45  ;;  %v2483_v63 = vmax.f32 %v4071_v32, 0.0 }
 0x24e   : > { %v2484_v49 = vmax.f32 %v4073_v44, 0.0 }
 0x24f   : > { %v2485_v55 = vmax.f32 %v4075_v24, 0.0 }
 0x250   : > { %v2528_v25 = vpack.c.bf16 %v2484_v49, %v2482_v14  ;;  %v6127_v49 = vld [vmem:[#allocation7_spill] sm:$0xff] }
 0x251   : > { %v2529_v47 = vpack.c.bf16 %v2485_v55, %v2483_v63  ;;  %v2387_v13 = vpop.f32.mrb[40].mxu0  ;;  %v4100_v63 = vadd.f32 %v6127_v49, %v5572_v2 }
 0x252   : > { %v4077_v56 = vadd.f32 %v2387_v13, %v1809_v15  ;;  %v2389_v3 = vpop.f32.mrb[41].mxu0  ;;  %v6128_v15 = vld [vmem:[#allocation8_spill] sm:$0xff]  ;;  %v6129_v13 = vld [vmem:[#allocation9_spill] sm:$0xff] }
 0x253   : > { %v4079_v0 = vadd.f32 %v2389_v3, %v1811_v17  ;;  %v2391_v48 = vpop.f32.mrb[42].mxu0  ;;  %2781 = vmatprep.mubr.bf16.mxu1 %v2529_v47 }
 0x254   : > { %v4081_v30 = vadd.f32 %v2391_v48, %v1813_v16  ;;  %v2393_v57 = vpop.f32.mrb[43].mxu0  ;;  %2782 = vmatmul.mubr.bf16.gmra.mrb[100].mxu1 %v2528_v25  ;;  %v2486_v41 = vmax.f32 %v4077_v56, 0.0  ;;  %v4102_v25 = vadd.f32 %v6128_v15, %v5574_v8  ;;  %v4104_v16 = vadd.f32 %v6129_v13, %v5572_v2 }
 0x255   : > { %v4083_v33 = vadd.f32 %v2393_v57, %v1815_v40  ;;  %v2487_v26 = vmax.f32 %v4079_v0, 0.0  ;;  %v6130_v40 = vld [vmem:[#allocation10_spill] sm:$0xff] }
 0x256   : > { %v2488_v18 = vmax.f32 %v4081_v30, 0.0  ;;  %v4106_v0 = vadd.f32 %v6130_v40, %v5574_v8 }
 0x257   : > { %v2489_v29 = vmax.f32 %v4083_v33, 0.0 }
 0x258   : > { %v2530_v27 = vpack.c.bf16 %v2488_v18, %v2486_v41  ;;  %v4607_v18 = vld [vmem:[%s6102_s5 + $0x8] sm:$0xff]  }
 0x259   : > { %v2531_v42 = vpack.c.bf16 %v2489_v29, %v2487_v26  ;;  %v2397_v34 = vpop.f32.mrb[44].mxu0  ;;  %3930 = vmatprep.subr.bf16.mxu1 %v4607_v18 }
 0x25a   : > { %v4085_v58 = vadd.f32 %v2397_v34, %v1819_v36  ;;  %v2399_v37 = vpop.f32.mrb[45].mxu0  ;;  %3931 = vmatpush3.bf16.msra.mxu1 %v4607_v18 }
 0x25b   : > { %v4087_v50 = vadd.f32 %v2399_v37, %v1821_v19  ;;  %v2401_v5 = vpop.f32.mrb[46].mxu0  ;;  %2789 = vmatprep.mubr.bf16.mxu1 %v2531_v42  ;;  %v6131_v19 = vld [vmem:[#allocation11_spill] sm:$0xff] }
 0x25c   : > { %v4089_v38 = vadd.f32 %v2401_v5, %v1823_v4  ;;  %v2403_v39 = vpop.f32.mrb[47].mxu0  ;;  %2790 = vmatmul.mubr.bf16.gmra.mrb[104].mxu1 %v2530_v27  ;;  %v2490_v6 = vmax.f32 %v4085_v58, 0.0  ;;  %v4108_v42 = vadd.f32 %v6131_v19, %v5572_v2  ;;  %v6132_v4 = vld [vmem:[#allocation12_spill] sm:$0xff] }
 0x25d   : > { %v4091_v61 = vadd.f32 %v2403_v39, %v1825_v20  ;;  %v2491_v28 = vmax.f32 %v4087_v50, 0.0  ;;  %v4110_v58 = vadd.f32 %v6132_v4, %v5574_v8  ;;  %v6133_v20 = vld [vmem:[#allocation13_spill] sm:$0xff]  ;;  %v6134_v39 = vld [vmem:[#allocation14_spill] sm:$0xff] }
 0x25e   : > { %v2492_v51 = vmax.f32 %v4089_v38, 0.0  ;;  %v4112_v50 = vadd.f32 %v6133_v20, %v5572_v2 }
 0x25f   : > { %v2493_v10 = vmax.f32 %v4091_v61, 0.0  ;;  %v4114_v61 = vadd.f32 %v6134_v39, %v5574_v8 }
 0x260   : > { %v2532_v35 = vpack.c.bf16 %v2492_v51, %v2490_v6 }
 0x261   : > { %v2533_v60 = vpack.c.bf16 %v2493_v10, %v2491_v28  ;;  %v2407_v9 = vpop.f32.mrb[48].mxu0 }
 0x262   : > { %v4093_v54 = vadd.f32 %v4092_v21, %v2407_v9  ;;  %v2409_v53 = vpop.f32.mrb[49].mxu0 }
 0x263   : > { %v4095_v11 = vadd.f32 %v4094_v52, %v2409_v53  ;;  %v2411_v1 = vpop.f32.mrb[50].mxu0  ;;  %2797 = vmatprep.mubr.bf16.mxu1 %v2533_v60  ;;  %v6135_v60 = vld [vmem:[#allocation15_spill] sm:$0xff] }
 0x264   : > { %v4097_v45 = vadd.f32 %v4096_v22, %v2411_v1  ;;  %v2413_v32 = vpop.f32.mrb[51].mxu0  ;;  %2798 = vmatmul.mubr.bf16.gmra.mrb[108].mxu1 %v2532_v35  ;;  %v2494_v44 = vmax.f32 %v4093_v54, 0.0  ;;  %v4116_v9 = vadd.f32 %v6135_v60, %v5572_v2  ;;  %v6136_v22 = vld [vmem:[#allocation16_spill] sm:$0xff] }
 0x265   : > { %v4099_v12 = vadd.f32 %v4098_v62, %v2413_v32  ;;  %v2495_v24 = vmax.f32 %v4095_v11, 0.0  ;;  %v4118_v54 = vadd.f32 %v6136_v22, %v5574_v8  ;;  %v6137_v62 = vld [vmem:[#allocation17_spill] sm:$0xff]  ;;  %v6138_v32 = vld [vmem:[#allocation18_spill] sm:$0xff] }
 0x266   : > { %v2496_v46 = vmax.f32 %v4097_v45, 0.0  ;;  %v4120_v11 = vadd.f32 %v6137_v62, %v5572_v2 }
 0x267   : > { %v2497_v14 = vmax.f32 %v4099_v12, 0.0  ;;  %v4122_v12 = vadd.f32 %v6138_v32, %v5574_v8  ;;  %v5713_v8 = vld [vmem:[%s6101_s4] ss:$0 sm:$0xff] }
 0x268   : > { %v2534_v55 = vpack.c.bf16 %v2496_v46, %v2494_v44 }
 0x269   : > { %v2535_v17 = vpack.c.bf16 %v2497_v14, %v2495_v24  ;;  %v2417_v47 = vpop.f32.mrb[52].mxu0 }
 0x26a   : > { %v4101_v56 = vadd.f32 %v4100_v63, %v2417_v47  ;;  %v2419_v3 = vpop.f32.mrb[53].mxu0 }
 0x26b   : > { %v4103_v48 = vadd.f32 %v4102_v25, %v2419_v3  ;;  %v2421_v30 = vpop.f32.mrb[54].mxu0  ;;  %2805 = vmatprep.mubr.bf16.mxu1 %v2535_v17 }
 0x26c   : > { %v4105_v57 = vadd.f32 %v4104_v16, %v2421_v30  ;;  %v2423_v33 = vpop.f32.mrb[55].mxu0  ;;  %2806 = vmatmul.mubr.bf16.gmra.mrb[112].mxu1 %v2534_v55  ;;  %v2498_v26 = vmax.f32 %v4101_v56, 0.0 }
 0x26d   : > { %v4107_v41 = vadd.f32 %v4106_v0, %v2423_v33  ;;  %v2499_v36 = vmax.f32 %v4103_v48, 0.0 }
 0x26e   : > { %v2500_v29 = vmax.f32 %v4105_v57, 0.0 }
 0x26f   : > { %v2501_v27 = vmax.f32 %v4107_v41, 0.0 }
 0x270   : > { %v2536_v34 = vpack.c.bf16 %v2500_v29, %v2498_v26 }
 0x271   : > { %v2537_v37 = vpack.c.bf16 %v2501_v27, %v2499_v36  ;;  %v2427_v43 = vpop.f32.mrb[56].mxu0 }
 0x272   : > { %v4109_v5 = vadd.f32 %v4108_v42, %v2427_v43  ;;  %v2429_v38 = vpop.f32.mrb[57].mxu0 }
 0x273   : > { %v4111_v6 = vadd.f32 %v4110_v58, %v2429_v38  ;;  %v2431_v51 = vpop.f32.mrb[58].mxu0  ;;  %2813 = vmatprep.mubr.bf16.mxu1 %v2537_v37 }
 0x274   : > { %v4113_v28 = vadd.f32 %v4112_v50, %v2431_v51  ;;  %v2433_v10 = vpop.f32.mrb[59].mxu0  ;;  %2814 = vmatmul.mubr.bf16.gmra.mrb[116].mxu1 %v2536_v34  ;;  %v2502_v21 = vmax.f32 %v4109_v5, 0.0 }
 0x275   : > { %v4115_v7 = vadd.f32 %v4114_v61, %v2433_v10  ;;  %v2503_v59 = vmax.f32 %v4111_v6, 0.0 }
 0x276   : > { %v2504_v35 = vmax.f32 %v4113_v28, 0.0 }
 0x277   : > { %v2505_v52 = vmax.f32 %v4115_v7, 0.0 }
 0x278   : > { %v2538_v31 = vpack.c.bf16 %v2504_v35, %v2502_v21 }
 0x279   : > { %v2539_v53 = vpack.c.bf16 %v2505_v52, %v2503_v59  ;;  %v2437_v23 = vpop.f32.mrb[60].mxu0 }
 0x27a   : > { %v4117_v1 = vadd.f32 %v4116_v9, %v2437_v23  ;;  %v2439_v45 = vpop.f32.mrb[61].mxu0 }
 0x27b   : > { %v4119_v44 = vadd.f32 %v4118_v54, %v2439_v45  ;;  %v2441_v46 = vpop.f32.mrb[62].mxu0  ;;  %2821 = vmatprep.mubr.bf16.mxu1 %v2539_v53 }
 0x27c   : > { %v4121_v24 = vadd.f32 %v4120_v11, %v2441_v46  ;;  %v2443_v14 = vpop.f32.mrb[63].mxu0  ;;  %2822 = vmatmul.mubr.bf16.gmra.mrb[120].mxu1 %v2538_v31  ;;  %v2506_v63 = vmax.f32 %v4117_v1, 0.0 }
 0x27d   : > { %v4123_v49 = vadd.f32 %v4122_v12, %v2443_v14  ;;  %v2507_v15 = vmax.f32 %v4119_v44, 0.0 }
 0x27e   : > { %v2508_v55 = vmax.f32 %v4121_v24, 0.0 }
 0x27f   : > { %v2509_v25 = vmax.f32 %v4123_v49, 0.0 }
 0x280   : > { %v2540_v17 = vpack.c.bf16 %v2508_v55, %v2506_v63 }
 0x281   : > { %v2541_v47 = vpack.c.bf16 %v2509_v25, %v2507_v15 }
 0x283   : > { %2829 = vmatprep.mubr.bf16.mxu1 %v2541_v47 }
 0x284   : > { %2830 = vmatmul.mubr.bf16.gmra.mrb[124].mxu1 %v2540_v17 }
 0x2df   : > { %v3814_v2 = vpop.f32.mrb[64].mxu1 }
 0x2e0   : > { %v3815_v13 = vpop.f32.mrb[65].mxu1 }
 0x2e1   : > { %v3816_v16 = vadd.f32 %v3815_v13, %v3814_v2  ;;  %v3817_v56 = vpop.f32.mrb[66].mxu1 }
 0x2e2   : > { %v3818_v3 = vpop.f32.mrb[67].mxu1 }
 0x2e3   : > { %v2712_v40 = vadd.f32 %v3816_v16, %v5713_v8  ;;  %v3819_v0 = vadd.f32 %v3818_v3, %v3817_v56 }
 0x2e5   : > { %v2715_v48 = vadd.f32 %v3819_v0, %v5713_v8  ;;  %v2838_v30 = vmax.f32 %v2712_v40, 0.0 }
 0x2e7   : > { %v2839_v57 = vmax.f32 %v2715_v48, 0.0  ;;  %v3820_v33 = vpop.f32.mrb[68].mxu1 }
 0x2e8   : > { %v3821_v41 = vpop.f32.mrb[69].mxu1 }
 0x2e9   : > { %v2870_v18 = vpack.c.bf16 %v2839_v57, %v2838_v30  ;;  %v3822_v26 = vadd.f32 %v3821_v41, %v3820_v33  ;;  %v3823_v29 = vpop.f32.mrb[70].mxu1 }
 0x2ea   : > { %v3824_v36 = vpop.f32.mrb[71].mxu1 }
 0x2eb   : > { %v2720_v27 = vadd.f32 %v3822_v26, %v5713_v8  ;;  %v3825_v19 = vadd.f32 %v3824_v36, %v3823_v29  ;;  %3932 = vmatprep.mubr.msk.bf16.mxu1 %vm2909_vm0, %v2870_v18 }
 0x2ed   : > { %v2723_v42 = vadd.f32 %v3825_v19, %v5713_v8  ;;  %v2840_v34 = vmax.f32 %v2720_v27, 0.0 }
 0x2ef   : > { %v2841_v4 = vmax.f32 %v2723_v42, 0.0  ;;  %v3826_v58 = vpop.f32.mrb[72].mxu1 }
 0x2f0   : > { %v3827_v37 = vpop.f32.mrb[73].mxu1 }
 0x2f1   : > { %v2871_v43 = vpack.c.bf16 %v2841_v4, %v2840_v34  ;;  %v3828_v20 = vadd.f32 %v3827_v37, %v3826_v58  ;;  %v3829_v50 = vpop.f32.mrb[74].mxu1 }
 0x2f2   : > { %v3830_v5 = vpop.f32.mrb[75].mxu1 }
 0x2f3   : > { %v2728_v38 = vadd.f32 %v3828_v20, %v5713_v8  ;;  %v3831_v39 = vadd.f32 %v3830_v5, %v3829_v50  ;;  %3933 = vmatmul.mubr.msk.bf16.vlgmr.msra.gmra.mrb[128].mxu1 %vm2909_vm0, %v2871_v43 }
 0x2f5   : > { %v2731_v61 = vadd.f32 %v3831_v39, %v5713_v8  ;;  %v2842_v6 = vmax.f32 %v2728_v38, 0.0 }
 0x2f7   : > { %v2843_v51 = vmax.f32 %v2731_v61, 0.0  ;;  %v3832_v28 = vpop.f32.mrb[76].mxu1 }
 0x2f8   : > { %v3833_v10 = vpop.f32.mrb[77].mxu1 }
 0x2f9   : > { %v2872_v7 = vpack.c.bf16 %v2843_v51, %v2842_v6  ;;  %v3834_v21 = vadd.f32 %v3833_v10, %v3832_v28  ;;  %v3835_v35 = vpop.f32.mrb[78].mxu1 }
 0x2fa   : > { %v3836_v59 = vpop.f32.mrb[79].mxu1 }
 0x2fb   : > { %v2736_v52 = vadd.f32 %v3834_v21, %v5713_v8  ;;  %v3837_v60 = vadd.f32 %v3836_v59, %v3835_v35  ;;  %3936 = vmatprep.mubr.msk.bf16.mxu1 %vm2909_vm0, %v2872_v7 }
 0x2fd   : > { %v2739_v9 = vadd.f32 %v3837_v60, %v5713_v8  ;;  %v2844_v31 = vmax.f32 %v2736_v52, 0.0 }
 0x2ff   : > { %v2845_v22 = vmax.f32 %v2739_v9, 0.0  ;;  %v3838_v54 = vpop.f32.mrb[80].mxu1 }
 0x300   : > { %v3839_v53 = vpop.f32.mrb[81].mxu1 }
 0x301   : > { %v2873_v23 = vpack.c.bf16 %v2845_v22, %v2844_v31  ;;  %v3840_v62 = vadd.f32 %v3839_v53, %v3838_v54  ;;  %v3841_v11 = vpop.f32.mrb[82].mxu1 }
 0x302   : > { %v3842_v1 = vpop.f32.mrb[83].mxu1 }
 0x303   : > { %v2744_v45 = vadd.f32 %v3840_v62, %v5713_v8  ;;  %v3843_v32 = vadd.f32 %v3842_v1, %v3841_v11  ;;  %3937 = vmatmul.mubr.msk.bf16.gmra.mrb[132].mxu1 %vm2909_vm0, %v2873_v23 }
 0x305   : > { %v2747_v12 = vadd.f32 %v3843_v32, %v5713_v8  ;;  %v2846_v44 = vmax.f32 %v2744_v45, 0.0 }
 0x307   : > { %v2847_v46 = vmax.f32 %v2747_v12, 0.0  ;;  %v3844_v24 = vpop.f32.mrb[84].mxu1 }
 0x308   : > { %v3845_v14 = vpop.f32.mrb[85].mxu1 }
 0x309   : > { %v2874_v49 = vpack.c.bf16 %v2847_v46, %v2846_v44  ;;  %v3846_v63 = vadd.f32 %v3845_v14, %v3844_v24  ;;  %v3847_v55 = vpop.f32.mrb[86].mxu1 }
 0x30a   : > { %v3848_v15 = vpop.f32.mrb[87].mxu1 }
 0x30b   : > { %v2752_v25 = vadd.f32 %v3846_v63, %v5713_v8  ;;  %v3849_v17 = vadd.f32 %v3848_v15, %v3847_v55  ;;  %3940 = vmatprep.mubr.msk.bf16.mxu1 %vm2909_vm0, %v2874_v49 }
 0x30d   : > { %v2755_v47 = vadd.f32 %v3849_v17, %v5713_v8  ;;  %v2848_v2 = vmax.f32 %v2752_v25, 0.0 }
 0x30f   : > { %v2849_v13 = vmax.f32 %v2755_v47, 0.0  ;;  %v3850_v16 = vpop.f32.mrb[88].mxu1 }
 0x310   : > { %v3851_v56 = vpop.f32.mrb[89].mxu1 }
 0x311   : > { %v2875_v3 = vpack.c.bf16 %v2849_v13, %v2848_v2  ;;  %v3852_v40 = vadd.f32 %v3851_v56, %v3850_v16  ;;  %v3853_v0 = vpop.f32.mrb[90].mxu1 }
 0x312   : > { %v3854_v48 = vpop.f32.mrb[91].mxu1 }
 0x313   : > { %v2760_v30 = vadd.f32 %v3852_v40, %v5713_v8  ;;  %v3855_v57 = vadd.f32 %v3854_v48, %v3853_v0  ;;  %3941 = vmatmul.mubr.msk.bf16.gmra.mrb[136].mxu1 %vm2909_vm0, %v2875_v3 }
 0x315   : > { %v2763_v33 = vadd.f32 %v3855_v57, %v5713_v8  ;;  %v2850_v41 = vmax.f32 %v2760_v30, 0.0 }
 0x317   : > { %v2851_v18 = vmax.f32 %v2763_v33, 0.0  ;;  %v3856_v26 = vpop.f32.mrb[92].mxu1 }
 0x318   : > { %v3857_v29 = vpop.f32.mrb[93].mxu1 }
 0x319   : > { %v2876_v36 = vpack.c.bf16 %v2851_v18, %v2850_v41  ;;  %v3858_v27 = vadd.f32 %v3857_v29, %v3856_v26  ;;  %v3859_v19 = vpop.f32.mrb[94].mxu1 }
 0x31a   : > { %v3860_v42 = vpop.f32.mrb[95].mxu1 }
 0x31b   : > { %v2768_v34 = vadd.f32 %v3858_v27, %v5713_v8  ;;  %v3861_v4 = vadd.f32 %v3860_v42, %v3859_v19  ;;  %3944 = vmatprep.mubr.msk.bf16.mxu1 %vm2909_vm0, %v2876_v36 }
 0x31d   : > { %v2771_v58 = vadd.f32 %v3861_v4, %v5713_v8  ;;  %v2852_v37 = vmax.f32 %v2768_v34, 0.0 }
 0x31f   : > { %v2853_v43 = vmax.f32 %v2771_v58, 0.0  ;;  %v3862_v20 = vpop.f32.mrb[96].mxu1 }
 0x320   : > { %v3863_v50 = vpop.f32.mrb[97].mxu1 }
 0x321   : > { %v2877_v5 = vpack.c.bf16 %v2853_v43, %v2852_v37  ;;  %v3864_v38 = vadd.f32 %v3863_v50, %v3862_v20  ;;  %v3865_v39 = vpop.f32.mrb[98].mxu1 }
 0x322   : > { %v3866_v61 = vpop.f32.mrb[99].mxu1 }
 0x323   : > { %v2776_v6 = vadd.f32 %v3864_v38, %v5713_v8  ;;  %v3867_v51 = vadd.f32 %v3866_v61, %v3865_v39  ;;  %3945 = vmatmul.mubr.msk.bf16.gmra.mrb[140].mxu1 %vm2909_vm0, %v2877_v5 }
 0x325   : > { %v2779_v28 = vadd.f32 %v3867_v51, %v5713_v8  ;;  %v2854_v10 = vmax.f32 %v2776_v6, 0.0 }
 0x327   : > { %v2855_v7 = vmax.f32 %v2779_v28, 0.0  ;;  %v3868_v21 = vpop.f32.mrb[100].mxu1 }
 0x328   : > { %v3869_v35 = vpop.f32.mrb[101].mxu1 }
 0x329   : > { %v2878_v59 = vpack.c.bf16 %v2855_v7, %v2854_v10  ;;  %v3870_v52 = vadd.f32 %v3869_v35, %v3868_v21  ;;  %v3871_v60 = vpop.f32.mrb[102].mxu1 }
 0x32a   : > { %v3872_v9 = vpop.f32.mrb[103].mxu1 }
 0x32b   : > { %v2784_v31 = vadd.f32 %v3870_v52, %v5713_v8  ;;  %v3873_v22 = vadd.f32 %v3872_v9, %v3871_v60  ;;  %3948 = vmatprep.mubr.msk.bf16.mxu1 %vm2909_vm0, %v2878_v59 }
 0x32d   : > { %v2787_v54 = vadd.f32 %v3873_v22, %v5713_v8  ;;  %v2856_v53 = vmax.f32 %v2784_v31, 0.0 }
 0x32f   : > { %v2857_v23 = vmax.f32 %v2787_v54, 0.0  ;;  %v3874_v62 = vpop.f32.mrb[104].mxu1 }
 0x330   : > { %v3875_v11 = vpop.f32.mrb[105].mxu1 }
 0x331   : > { %v2879_v1 = vpack.c.bf16 %v2857_v23, %v2856_v53  ;;  %v3876_v45 = vadd.f32 %v3875_v11, %v3874_v62  ;;  %v3877_v32 = vpop.f32.mrb[106].mxu1 }
 0x332   : > { %v3878_v12 = vpop.f32.mrb[107].mxu1 }
 0x333   : > { %v2792_v44 = vadd.f32 %v3876_v45, %v5713_v8  ;;  %v3879_v46 = vadd.f32 %v3878_v12, %v3877_v32  ;;  %3949 = vmatmul.mubr.msk.bf16.gmra.mrb[144].mxu1 %vm2909_vm0, %v2879_v1  ;;  %v5766_v32 = vld [vmem:[%s6103_s6] ss:$0 sm:$0xff] }
 0x335   : > { %v2795_v24 = vadd.f32 %v3879_v46, %v5713_v8  ;;  %v2858_v14 = vmax.f32 %v2792_v44, 0.0 }
 0x337   : > { %v2859_v49 = vmax.f32 %v2795_v24, 0.0  ;;  %v3880_v63 = vpop.f32.mrb[108].mxu1 }
 0x338   : > { %v3881_v55 = vpop.f32.mrb[109].mxu1 }
 0x339   : > { %v2880_v15 = vpack.c.bf16 %v2859_v49, %v2858_v14  ;;  %v3882_v25 = vadd.f32 %v3881_v55, %v3880_v63  ;;  %v3883_v17 = vpop.f32.mrb[110].mxu1 }
 0x33a   : > { %v3884_v47 = vpop.f32.mrb[111].mxu1 }
 0x33b   : > { %v2800_v2 = vadd.f32 %v3882_v25, %v5713_v8  ;;  %v3885_v13 = vadd.f32 %v3884_v47, %v3883_v17  ;;  %3952 = vmatprep.mubr.msk.bf16.mxu1 %vm2909_vm0, %v2880_v15 }
 0x33d   : > { %v2803_v16 = vadd.f32 %v3885_v13, %v5713_v8  ;;  %v2860_v56 = vmax.f32 %v2800_v2, 0.0 }
 0x33f   : > { %v2861_v3 = vmax.f32 %v2803_v16, 0.0  ;;  %v3886_v40 = vpop.f32.mrb[112].mxu1 }
 0x340   : > { %v3887_v0 = vpop.f32.mrb[113].mxu1 }
 0x341   : > { %v2881_v48 = vpack.c.bf16 %v2861_v3, %v2860_v56  ;;  %v3888_v30 = vadd.f32 %v3887_v0, %v3886_v40  ;;  %v3889_v57 = vpop.f32.mrb[114].mxu1 }
 0x342   : > { %v3890_v33 = vpop.f32.mrb[115].mxu1 }
 0x343   : > { %v2808_v41 = vadd.f32 %v3888_v30, %v5713_v8  ;;  %v3891_v18 = vadd.f32 %v3890_v33, %v3889_v57  ;;  %3953 = vmatmul.mubr.msk.bf16.gmra.mrb[148].mxu1 %vm2909_vm0, %v2881_v48 }
 0x345   : > { %v2811_v26 = vadd.f32 %v3891_v18, %v5713_v8  ;;  %v2862_v29 = vmax.f32 %v2808_v41, 0.0 }
 0x347   : > { %v2863_v36 = vmax.f32 %v2811_v26, 0.0  ;;  %v3892_v27 = vpop.f32.mrb[116].mxu1 }
 0x348   : > { %v3893_v19 = vpop.f32.mrb[117].mxu1 }
 0x349   : > { %v2882_v42 = vpack.c.bf16 %v2863_v36, %v2862_v29  ;;  %v3894_v34 = vadd.f32 %v3893_v19, %v3892_v27  ;;  %v3895_v4 = vpop.f32.mrb[118].mxu1 }
 0x34a   : > { %v3896_v58 = vpop.f32.mrb[119].mxu1 }
 0x34b   : > { %v2816_v37 = vadd.f32 %v3894_v34, %v5713_v8  ;;  %v3897_v43 = vadd.f32 %v3896_v58, %v3895_v4  ;;  %3956 = vmatprep.mubr.msk.bf16.mxu1 %vm2909_vm0, %v2882_v42 }
 0x34d   : > { %v2819_v20 = vadd.f32 %v3897_v43, %v5713_v8  ;;  %v2864_v50 = vmax.f32 %v2816_v37, 0.0 }
 0x34f   : > { %v2865_v5 = vmax.f32 %v2819_v20, 0.0  ;;  %v3898_v38 = vpop.f32.mrb[120].mxu1 }
 0x350   : > { %v3899_v39 = vpop.f32.mrb[121].mxu1 }
 0x351   : > { %v2883_v61 = vpack.c.bf16 %v2865_v5, %v2864_v50  ;;  %v3900_v6 = vadd.f32 %v3899_v39, %v3898_v38  ;;  %v3901_v51 = vpop.f32.mrb[122].mxu1 }
 0x352   : > { %v3902_v28 = vpop.f32.mrb[123].mxu1 }
 0x353   : > { %v2824_v10 = vadd.f32 %v3900_v6, %v5713_v8  ;;  %v3903_v7 = vadd.f32 %v3902_v28, %v3901_v51  ;;  %3957 = vmatmul.mubr.msk.bf16.gmra.mrb[152].mxu1 %vm2909_vm0, %v2883_v61 }
 0x355   : > { %v2827_v21 = vadd.f32 %v3903_v7, %v5713_v8  ;;  %v2866_v35 = vmax.f32 %v2824_v10, 0.0 }
 0x357   : > { %v2867_v59 = vmax.f32 %v2827_v21, 0.0  ;;  %v3904_v52 = vpop.f32.mrb[124].mxu1 }
 0x358   : > { %v3905_v60 = vpop.f32.mrb[125].mxu1 }
 0x359   : > { %v2884_v9 = vpack.c.bf16 %v2867_v59, %v2866_v35  ;;  %v3906_v31 = vadd.f32 %v3905_v60, %v3904_v52  ;;  %v3907_v22 = vpop.f32.mrb[126].mxu1 }
 0x35a   : > { %v3908_v54 = vpop.f32.mrb[127].mxu1 }
 0x35b   : > { %v2832_v53 = vadd.f32 %v3906_v31, %v5713_v8  ;;  %v3909_v23 = vadd.f32 %v3908_v54, %v3907_v22  ;;  %3960 = vmatprep.mubr.msk.bf16.mxu1 %vm2909_vm0, %v2884_v9 }
 0x35d   : > { %v2835_v62 = vadd.f32 %v3909_v23, %v5713_v8  ;;  %v2868_v11 = vmax.f32 %v2832_v53, 0.0 }
 0x35f   : > { %v2869_v1 = vmax.f32 %v2835_v62, 0.0 }
 0x361   : > { %v2885_v45 = vpack.c.bf16 %v2869_v1, %v2868_v11 }
 0x363   : > { %3961 = vmatmul.mubr.msk.bf16.gmra.mrb[156].mxu1 %vm2909_vm0, %v2885_v45 }
 0x3c6   : > { %v3934_v12 = vpop.f32.mrb[128].mxu1 }
 0x3c7   : > { %v5769_v44 = vadd.f32 %v3934_v12, %v5766_v32  ;;  %v2992_v46 = vpop.f32.mrb[129].mxu1 }
 0x3c8   : > { %v5772_v24 = vadd.f32 %v5766_v32, %v2992_v46  ;;  %v3935_v14 = vpop.f32.mrb[130].mxu1 }
 0x3c9   : > { %3123 = vmax.xlane.f32.xlu1 %v5769_v44  ;;  %v2995_v8 = vpop.f32.mrb[131].mxu1  ;;  %v5777_v49 = vadd.f32 %v3935_v14, %v5766_v32 }
 0x3ca   : > { %3119 = vmax.xlane.f32.xlu0 %v5772_v24  ;;  %v5780_v63 = vadd.f32 %v5766_v32, %v2995_v8 }
 0x3cd   : > { %3125 = vmax.xlane.f32.xlu1 %v5777_v49 }
 0x3ce   : > { %3121 = vmax.xlane.f32.xlu0 %v5780_v63 }
 0x3d6   : > { %v3938_v55 = vpop.f32.mrb[132].mxu1 }
 0x3d7   : > { %v5785_v15 = vadd.f32 %v3938_v55, %v5766_v32  ;;  %v3008_v25 = vpop.f32.mrb[133].mxu1 }
 0x3d8   : > { %v3939_v17 = vpop.f32.mrb[134].mxu1  ;;  %v5792_v13 = vadd.f32 %v5766_v32, %v3008_v25 }
 0x3d9   : > { %v5788_v47 = vadd.f32 %v3939_v17, %v5766_v32  ;;  %v3011_v2 = vpop.f32.mrb[135].mxu1  ;;  %3131 = vmax.xlane.f32.xlu0 %v5785_v15 }
 0x3da   : > { %v5796_v16 = vadd.f32 %v5766_v32, %v3011_v2 }
 0x3db   : > { %3133 = vmax.xlane.f32.xlu1 %v5788_v47 }
 0x3dd   : > { %3127 = vmax.xlane.f32.xlu0 %v5792_v13 }
 0x3df   : > { %3129 = vmax.xlane.f32.xlu1 %v5796_v16 }
 0x3e6   : > { %v3942_v56 = vpop.f32.mrb[136].mxu1 }
 0x3e7   : > { %v5801_v3 = vadd.f32 %v3942_v56, %v5766_v32  ;;  %v3024_v40 = vpop.f32.mrb[137].mxu1 }
 0x3e8   : > { %v3943_v0 = vpop.f32.mrb[138].mxu1  ;;  %v5808_v57 = vadd.f32 %v5766_v32, %v3024_v40 }
 0x3e9   : > { %v5804_v48 = vadd.f32 %v3943_v0, %v5766_v32  ;;  %v3027_v30 = vpop.f32.mrb[139].mxu1  ;;  %3139 = vmax.xlane.f32.xlu0 %v5801_v3 }
 0x3ea   : > { %v5812_v33 = vadd.f32 %v5766_v32, %v3027_v30 }
 0x3eb   : > { %3141 = vmax.xlane.f32.xlu1 %v5804_v48 }
 0x3ed   : > { %3135 = vmax.xlane.f32.xlu0 %v5808_v57 }
 0x3ef   : > { %3137 = vmax.xlane.f32.xlu1 %v5812_v33 }
 0x3f6   : > { %v3946_v41 = vpop.f32.mrb[140].mxu1 }
 0x3f7   : > { %v5817_v18 = vadd.f32 %v3946_v41, %v5766_v32  ;;  %v3040_v26 = vpop.f32.mrb[141].mxu1 }
 0x3f8   : > { %v3947_v29 = vpop.f32.mrb[142].mxu1  ;;  %v5824_v19 = vadd.f32 %v5766_v32, %v3040_v26 }
 0x3f9   : > { %v5820_v36 = vadd.f32 %v3947_v29, %v5766_v32  ;;  %v3043_v27 = vpop.f32.mrb[143].mxu1  ;;  %3147 = vmax.xlane.f32.xlu0 %v5817_v18 }
 0x3fa   : > { %v5828_v42 = vadd.f32 %v5766_v32, %v3043_v27 }
 0x3fb   : > { %3149 = vmax.xlane.f32.xlu1 %v5820_v36 }
 0x3fd   : > { %3143 = vmax.xlane.f32.xlu0 %v5824_v19 }
 0x3ff   : > { %3145 = vmax.xlane.f32.xlu1 %v5828_v42 }
 0x406   : > { %v3950_v34 = vpop.f32.mrb[144].mxu1 }
 0x407   : > { %v5833_v4 = vadd.f32 %v3950_v34, %v5766_v32  ;;  %v3056_v58 = vpop.f32.mrb[145].mxu1 }
 0x408   : > { %v3951_v37 = vpop.f32.mrb[146].mxu1  ;;  %v5840_v50 = vadd.f32 %v5766_v32, %v3056_v58 }
 0x409   : > { %v5836_v43 = vadd.f32 %v3951_v37, %v5766_v32  ;;  %v3059_v20 = vpop.f32.mrb[147].mxu1  ;;  %3155 = vmax.xlane.f32.xlu0 %v5833_v4 }
 0x40a   : > { %v5844_v5 = vadd.f32 %v5766_v32, %v3059_v20 }
 0x40b   : > { %3157 = vmax.xlane.f32.xlu1 %v5836_v43 }
 0x40d   : > { %3151 = vmax.xlane.f32.xlu0 %v5840_v50 }
 0x40f   : > { %3153 = vmax.xlane.f32.xlu1 %v5844_v5 }
 0x416   : > { %v3954_v38 = vpop.f32.mrb[148].mxu1 }
 0x417   : > { %v5849_v39 = vadd.f32 %v3954_v38, %v5766_v32  ;;  %v3072_v61 = vpop.f32.mrb[149].mxu1 }
 0x418   : > { %v3955_v6 = vpop.f32.mrb[150].mxu1  ;;  %v5856_v10 = vadd.f32 %v5766_v32, %v3072_v61 }
 0x419   : > { %v5852_v51 = vadd.f32 %v3955_v6, %v5766_v32  ;;  %v3075_v28 = vpop.f32.mrb[151].mxu1  ;;  %3163 = vmax.xlane.f32.xlu0 %v5849_v39 }
 0x41a   : > { %v5860_v7 = vadd.f32 %v5766_v32, %v3075_v28 }
 0x41b   : > { %3165 = vmax.xlane.f32.xlu1 %v5852_v51 }
 0x41d   : > { %3159 = vmax.xlane.f32.xlu0 %v5856_v10 }
 0x41f   : > { %3161 = vmax.xlane.f32.xlu1 %v5860_v7 }
 0x426   : > { %v3958_v21 = vpop.f32.mrb[152].mxu1 }
 0x427   : > { %v5865_v35 = vadd.f32 %v3958_v21, %v5766_v32  ;;  %v3088_v59 = vpop.f32.mrb[153].mxu1 }
 0x428   : > { %v3959_v52 = vpop.f32.mrb[154].mxu1  ;;  %v5872_v31 = vadd.f32 %v5766_v32, %v3088_v59 }
 0x429   : > { %v5868_v60 = vadd.f32 %v3959_v52, %v5766_v32  ;;  %v3091_v9 = vpop.f32.mrb[155].mxu1  ;;  %3171 = vmax.xlane.f32.xlu0 %v5865_v35 }
 0x42a   : > { %v5876_v22 = vadd.f32 %v5766_v32, %v3091_v9 }
 0x42b   : > { %3173 = vmax.xlane.f32.xlu1 %v5868_v60 }
 0x42d   : > { %3167 = vmax.xlane.f32.xlu0 %v5872_v31 }
 0x42f   : > { %3169 = vmax.xlane.f32.xlu1 %v5876_v22 }
 0x436   : > { %v3962_v54 = vpop.f32.mrb[156].mxu1 }
 0x437   : > { %v3104_v53 = vpop.f32.mrb[157].mxu1  ;;  %v5888_v45 = vadd.f32 %v3962_v54, %v5766_v32 }
 0x438   : > { %v5881_v23 = vadd.f32 %v5766_v32, %v3104_v53  ;;  %v3963_v62 = vpop.f32.mrb[158].mxu1 }
 0x439   : > { %v3107_v11 = vpop.f32.mrb[159].mxu1  ;;  %v5892_v12 = vadd.f32 %v3963_v62, %v5766_v32 }
 0x43a   : > { %v5884_v1 = vadd.f32 %v5766_v32, %v3107_v11  ;;  %3175 = vmax.xlane.f32.xlu0 %v5881_v23 }
 0x43c   : > { %3177 = vmax.xlane.f32.xlu1 %v5884_v1 }
 0x43e   : > { %3179 = vmax.xlane.f32.xlu0 %v5888_v45 }
 0x440   : > { %3181 = vmax.xlane.f32.xlu1 %v5892_v12 }
 0x456   : > { %v3124_v46 = vpop.xlane.xlu1 %3123 }
 0x457   : > { %v5897_v14 = vsub.f32 %v5769_v44, %v3124_v46  ;;  %v3120_v8 = vpop.xlane.xlu0 %3119 }
 0x458   : > { %v5900_v55 = vsub.f32 %v5772_v24, %v3120_v8 }
 0x459   : > { %v3219_v25 = vmul.f32 1.442695, %v5897_v14 }
 0x45a   : > { %v3215_v17 = vmul.f32 1.442695, %v5900_v55  ;;  %v3126_v2 = vpop.xlane.xlu1 %3125 }
 0x45b   : > { %4608 = vpow2.f32 %v3219_v25  ;;  %v5905_v32 = vsub.f32 %v5777_v49, %v3126_v2  ;;  %v3122_v56 = vpop.xlane.xlu0 %3121 }
 0x45c   : > { %v5908_v40 = vsub.f32 %v5780_v63, %v3122_v56  ;;  %4610 = vpow2.f32 %v3215_v17 }
 0x45d   : > { %v3221_v44 = vmul.f32 1.442695, %v5905_v32 }
 0x45e   : > { %v3217_v24 = vmul.f32 1.442695, %v5908_v40 }
 0x45f   : > { %4612 = vpow2.f32 %v3221_v44 }
 0x460   : > { %4614 = vpow2.f32 %v3217_v24 }
 0x465   : > { %v4609_v0 = vpop.eup %4608 }
 0x466   : > { %3283 = vadd.xlane.f32.xlu0 %v4609_v0  ;;  %v3132_v30 = vpop.xlane.xlu0 %3131  ;;  %v4611_v26 = vpop.eup %4610 }
 0x467   : > { %v5913_v41 = vsub.f32 %v5785_v15, %v3132_v30 }
 0x468   : > { %v3134_v49 = vpop.xlane.xlu1 %3133 }
 0x469   : > { %v4613_v29 = vpop.eup %4612  ;;  %v3227_v27 = vmul.f32 1.442695, %v5913_v41  ;;  %v5917_v63 = vsub.f32 %v5788_v47, %v3134_v49 }
 0x46a   : > { %3285 = vadd.xlane.f32.xlu1 %v4613_v29  ;;  %3279 = vadd.xlane.f32.xlu0 %v4611_v26  ;;  %v3128_v34 = vpop.xlane.xlu0 %3127  ;;  %v4615_v15 = vpop.eup %4614 }
 0x46b   : > { %4616 = vpow2.f32 %v3227_v27  ;;  %v3229_v58 = vmul.f32 1.442695, %v5917_v63  ;;  %v5921_v37 = vsub.f32 %v5792_v13, %v3128_v34 }
 0x46c   : > { %v3130_v20 = vpop.xlane.xlu1 %3129 }
 0x46d   : > { %4618 = vpow2.f32 %v3229_v58  ;;  %v3223_v38 = vmul.f32 1.442695, %v5921_v37  ;;  %v5925_v61 = vsub.f32 %v5796_v16, %v3130_v20 }
 0x46e   : > { %3281 = vadd.xlane.f32.xlu1 %v4615_v15 }
 0x46f   : > { %4620 = vpow2.f32 %v3223_v38  ;;  %v3225_v47 = vmul.f32 1.442695, %v5925_v61 }
 0x471   : > { %4622 = vpow2.f32 %v3225_v47 }
 0x475   : > { %v4617_v6 = vpop.eup %4616 }
 0x476   : > { %3291 = vadd.xlane.f32.xlu0 %v4617_v6  ;;  %v3140_v28 = vpop.xlane.xlu0 %3139 }
 0x477   : > { %v4619_v21 = vpop.eup %4618  ;;  %v5929_v13 = vsub.f32 %v5801_v3, %v3140_v28 }
 0x478   : > { %v3142_v59 = vpop.xlane.xlu1 %3141  ;;  %3293 = vadd.xlane.f32.xlu1 %v4619_v21 }
 0x479   : > { %v4621_v52 = vpop.eup %4620  ;;  %v3235_v9 = vmul.f32 1.442695, %v5929_v13  ;;  %v5933_v16 = vsub.f32 %v5804_v48, %v3142_v59 }
 0x47a   : > { %3287 = vadd.xlane.f32.xlu0 %v4621_v52  ;;  %v3136_v54 = vpop.xlane.xlu0 %3135 }
 0x47b   : > { %v4623_v53 = vpop.eup %4622  ;;  %4624 = vpow2.f32 %v3235_v9  ;;  %v3237_v62 = vmul.f32 1.442695, %v5933_v16  ;;  %v5937_v11 = vsub.f32 %v5808_v57, %v3136_v54 }
 0x47c   : > { %v3138_v46 = vpop.xlane.xlu1 %3137  ;;  %3289 = vadd.xlane.f32.xlu1 %v4623_v53 }
 0x47d   : > { %4626 = vpow2.f32 %v3237_v62  ;;  %v3231_v3 = vmul.f32 1.442695, %v5937_v11  ;;  %v5941_v8 = vsub.f32 %v5812_v33, %v3138_v46 }
 0x47f   : > { %4628 = vpow2.f32 %v3231_v3  ;;  %v3233_v48 = vmul.f32 1.442695, %v5941_v8 }
 0x481   : > { %4630 = vpow2.f32 %v3233_v48 }
 0x485   : > { %v4625_v25 = vpop.eup %4624 }
 0x486   : > { %3299 = vadd.xlane.f32.xlu0 %v4625_v25  ;;  %v3148_v17 = vpop.xlane.xlu0 %3147 }
 0x487   : > { %v4627_v2 = vpop.eup %4626  ;;  %v5945_v56 = vsub.f32 %v5817_v18, %v3148_v17 }
 0x488   : > { %v3150_v57 = vpop.xlane.xlu1 %3149  ;;  %3301 = vadd.xlane.f32.xlu1 %v4627_v2 }
 0x489   : > { %v4629_v44 = vpop.eup %4628  ;;  %v3243_v24 = vmul.f32 1.442695, %v5945_v56  ;;  %v5949_v0 = vsub.f32 %v5820_v36, %v3150_v57 }
 0x48a   : > { %3295 = vadd.xlane.f32.xlu0 %v4629_v44  ;;  %v3144_v33 = vpop.xlane.xlu0 %3143 }
 0x48b   : > { %v4631_v30 = vpop.eup %4630  ;;  %4632 = vpow2.f32 %v3243_v24  ;;  %v3245_v26 = vmul.f32 1.442695, %v5949_v0  ;;  %v5953_v49 = vsub.f32 %v5824_v19, %v3144_v33 }
 0x48c   : > { %v3146_v29 = vpop.xlane.xlu1 %3145  ;;  %3297 = vadd.xlane.f32.xlu1 %v4631_v30 }
 0x48d   : > { %4634 = vpow2.f32 %v3245_v26  ;;  %v3239_v18 = vmul.f32 1.442695, %v5953_v49  ;;  %v5957_v27 = vsub.f32 %v5828_v42, %v3146_v29 }
 0x48f   : > { %4636 = vpow2.f32 %v3239_v18  ;;  %v3241_v36 = vmul.f32 1.442695, %v5957_v27 }
 0x491   : > { %4638 = vpow2.f32 %v3241_v36 }
 0x495   : > { %v4633_v34 = vpop.eup %4632 }
 0x496   : > { %3307 = vadd.xlane.f32.xlu0 %v4633_v34  ;;  %v3156_v58 = vpop.xlane.xlu0 %3155 }
 0x497   : > { %v4635_v20 = vpop.eup %4634  ;;  %v5961_v15 = vsub.f32 %v5833_v4, %v3156_v58 }
 0x498   : > { %v3158_v19 = vpop.xlane.xlu1 %3157  ;;  %3309 = vadd.xlane.f32.xlu1 %v4635_v20 }
 0x499   : > { %v4637_v38 = vpop.eup %4636  ;;  %v3251_v47 = vmul.f32 1.442695, %v5961_v15  ;;  %v5965_v6 = vsub.f32 %v5836_v43, %v3158_v19 }
 0x49a   : > { %3303 = vadd.xlane.f32.xlu0 %v4637_v38  ;;  %v3152_v42 = vpop.xlane.xlu0 %3151 }
 0x49b   : > { %v4639_v28 = vpop.eup %4638  ;;  %4640 = vpow2.f32 %v3251_v47  ;;  %v3253_v21 = vmul.f32 1.442695, %v5965_v6  ;;  %v5969_v59 = vsub.f32 %v5840_v50, %v3152_v42 }
 0x49c   : > { %v3154_v52 = vpop.xlane.xlu1 %3153  ;;  %3305 = vadd.xlane.f32.xlu1 %v4639_v28 }
 0x49d   : > { %4642 = vpow2.f32 %v3253_v21  ;;  %v3247_v4 = vmul.f32 1.442695, %v5969_v59  ;;  %v5973_v9 = vsub.f32 %v5844_v5, %v3154_v52 }
 0x49f   : > { %4644 = vpow2.f32 %v3247_v4  ;;  %v3249_v43 = vmul.f32 1.442695, %v5973_v9 }
 0x4a1   : > { %4646 = vpow2.f32 %v3249_v43 }
 0x4a5   : > { %v4641_v54 = vpop.eup %4640 }
 0x4a6   : > { %3315 = vadd.xlane.f32.xlu0 %v4641_v54  ;;  %v3164_v53 = vpop.xlane.xlu0 %3163 }
 0x4a7   : > { %v4643_v62 = vpop.eup %4642  ;;  %v5977_v46 = vsub.f32 %v5849_v39, %v3164_v53 }
 0x4a8   : > { %v3166_v50 = vpop.xlane.xlu1 %3165  ;;  %3317 = vadd.xlane.f32.xlu1 %v4643_v62 }
 0x4a9   : > { %v4645_v3 = vpop.eup %4644  ;;  %v3259_v48 = vmul.f32 1.442695, %v5977_v46  ;;  %v5981_v25 = vsub.f32 %v5852_v51, %v3166_v50 }
 0x4aa   : > { %3311 = vadd.xlane.f32.xlu0 %v4645_v3  ;;  %v3160_v5 = vpop.xlane.xlu0 %3159 }
 0x4ab   : > { %v4647_v17 = vpop.eup %4646  ;;  %4648 = vpow2.f32 %v3259_v48  ;;  %v3261_v2 = vmul.f32 1.442695, %v5981_v25  ;;  %v5985_v57 = vsub.f32 %v5856_v10, %v3160_v5 }
 0x4ac   : > { %v3162_v44 = vpop.xlane.xlu1 %3161  ;;  %3313 = vadd.xlane.f32.xlu1 %v4647_v17 }
 0x4ad   : > { %4650 = vpow2.f32 %v3261_v2  ;;  %v3255_v39 = vmul.f32 1.442695, %v5985_v57  ;;  %v5989_v24 = vsub.f32 %v5860_v7, %v3162_v44 }
 0x4af   : > { %4652 = vpow2.f32 %v3255_v39  ;;  %v3257_v51 = vmul.f32 1.442695, %v5989_v24 }
 0x4b1   : > { %4654 = vpow2.f32 %v3257_v51 }
 0x4b5   : > { %v4649_v33 = vpop.eup %4648 }
 0x4b6   : > { %3323 = vadd.xlane.f32.xlu0 %v4649_v33  ;;  %v3172_v30 = vpop.xlane.xlu0 %3171 }
 0x4b7   : > { %v4651_v26 = vpop.eup %4650  ;;  %v5993_v29 = vsub.f32 %v5865_v35, %v3172_v30 }
 0x4b8   : > { %v3174_v10 = vpop.xlane.xlu1 %3173  ;;  %3325 = vadd.xlane.f32.xlu1 %v4651_v26 }
 0x4b9   : > { %v4653_v18 = vpop.eup %4652  ;;  %v3267_v36 = vmul.f32 1.442695, %v5993_v29  ;;  %v5997_v34 = vsub.f32 %v5868_v60, %v3174_v10 }
 0x4ba   : > { %3319 = vadd.xlane.f32.xlu0 %v4653_v18  ;;  %v3168_v7 = vpop.xlane.xlu0 %3167 }
 0x4bb   : > { %v4655_v58 = vpop.eup %4654  ;;  %4656 = vpow2.f32 %v3267_v36  ;;  %v3269_v20 = vmul.f32 1.442695, %v5997_v34  ;;  %v6001_v19 = vsub.f32 %v5872_v31, %v3168_v7 }
 0x4bc   : > { %v3170_v38 = vpop.xlane.xlu1 %3169  ;;  %3321 = vadd.xlane.f32.xlu1 %v4655_v58 }
 0x4bd   : > { %4658 = vpow2.f32 %v3269_v20  ;;  %v3263_v35 = vmul.f32 1.442695, %v6001_v19  ;;  %v6005_v47 = vsub.f32 %v5876_v22, %v3170_v38 }
 0x4bf   : > { %4660 = vpow2.f32 %v3263_v35  ;;  %v3265_v60 = vmul.f32 1.442695, %v6005_v47 }
 0x4c1   : > { %4662 = vpow2.f32 %v3265_v60 }
 0x4c5   : > { %v4657_v42 = vpop.eup %4656 }
 0x4c6   : > { %3331 = vadd.xlane.f32.xlu0 %v4657_v42 }
 0x4c7   : > { %v4659_v28 = vpop.eup %4658  ;;  %v3176_v21 = vpop.xlane.xlu0 %3175 }
 0x4c8   : > { %v6009_v52 = vsub.f32 %v5881_v23, %v3176_v21  ;;  %3333 = vadd.xlane.f32.xlu1 %v4659_v28 }
 0x4c9   : > { %v4661_v31 = vpop.eup %4660  ;;  %v3178_v4 = vpop.xlane.xlu1 %3177 }
 0x4ca   : > { %v3271_v43 = vmul.f32 1.442695, %v6009_v52  ;;  %v6013_v54 = vsub.f32 %v5884_v1, %v3178_v4  ;;  %3327 = vadd.xlane.f32.xlu0 %v4661_v31 }
 0x4cb   : > { %v4663_v22 = vpop.eup %4662  ;;  %v3180_v53 = vpop.xlane.xlu0 %3179 }
 0x4cc   : > { %4664 = vpow2.f32 %v3271_v43  ;;  %v3273_v62 = vmul.f32 1.442695, %v6013_v54  ;;  %v6017_v50 = vsub.f32 %v5888_v45, %v3180_v53  ;;  %3329 = vadd.xlane.f32.xlu1 %v4663_v22 }
 0x4cd   : > { %v3182_v23 = vpop.xlane.xlu1 %3181 }
 0x4ce   : > { %4666 = vpow2.f32 %v3273_v62  ;;  %v3275_v3 = vmul.f32 1.442695, %v6017_v50  ;;  %v6021_v48 = vsub.f32 %v5892_v12, %v3182_v23 }
 0x4d0   : > { %4668 = vpow2.f32 %v3275_v3  ;;  %v3277_v1 = vmul.f32 1.442695, %v6021_v48 }
 0x4d2   : > { %4670 = vpow2.f32 %v3277_v1 }
 0x4d6   : > { %v4665_v5 = vpop.eup %4664 }
 0x4d7   : > { %3335 = vadd.xlane.f32.xlu0 %v4665_v5 }
 0x4d8   : > { %v4667_v17 = vpop.eup %4666 }
 0x4d9   : > { %3337 = vadd.xlane.f32.xlu1 %v4667_v17 }
 0x4da   : > { %v4669_v2 = vpop.eup %4668 }
 0x4db   : > { %3339 = vadd.xlane.f32.xlu0 %v4669_v2 }
 0x4dc   : > { %v4671_v45 = vpop.eup %4670 }
 0x4dd   : > { %3341 = vadd.xlane.f32.xlu1 %v4671_v45 }
 0x4f3   : > { %v3284_v44 = vpop.xlane.xlu0 %3283 }
 0x4f4   : > { %4672 = vlog2.f32 %v3284_v44 }
 0x4f7   : > { %v3286_v39 = vpop.xlane.xlu1 %3285  ;;  %v3280_v51 = vpop.xlane.xlu0 %3279 }
 0x4f8   : > { %4674 = vlog2.f32 %v3286_v39 }
 0x4f9   : > { %4676 = vlog2.f32 %v3280_v51 }
 0x4fb   : > { %v3282_v12 = vpop.xlane.xlu1 %3281 }
 0x4fc   : > { %4678 = vlog2.f32 %v3282_v12 }
 0x4fe   : > { %v4673_v33 = vpop.eup %4672 }
 0x4ff   : > { %v3348_v30 = vmul.f32 0.6931472, %v4673_v33 }
 0x501   : > { %v3409_v26 = vsub.f32 %v5897_v14, %v3348_v30 }
 0x502   : > { %v4675_v10 = vpop.eup %4674 }
 0x503   : > { %v4677_v18 = vpop.eup %4676  ;;  %3441 = vst [vmem:[%s6028_s15 + $0x10] sm:$0xff] %v3409_v26  ;;  %v3350_v36 = vmul.f32 0.6931472, %v4675_v10  ;;  %v3292_v7 = vpop.xlane.xlu0 %3291 }
 0x504   : > { %v3344_v58 = vmul.f32 0.6931472, %v4677_v18  ;;  %4680 = vlog2.f32 %v3292_v7 }
 0x505   : > { %v3410_v20 = vsub.f32 %v5905_v32, %v3350_v36  ;;  %v3294_v38 = vpop.xlane.xlu1 %3293 }
 0x506   : > { %v4679_v35 = vpop.eup %4678  ;;  %v3407_v60 = vsub.f32 %v5900_v55, %v3344_v58  ;;  %4682 = vlog2.f32 %v3294_v38 }
 0x507   : > { %3442 = vst [vmem:[%s6028_s15 + $0x18] sm:$0xff] %v3410_v20  ;;  %v3346_v42 = vmul.f32 0.6931472, %v4679_v35  ;;  %v3288_v14 = vpop.xlane.xlu0 %3287 }
 0x508   : > { %3439 = vst [vmem:[%s6028_s15] sm:$0xff] %v3407_v60  ;;  %4684 = vlog2.f32 %v3288_v14 }
 0x509   : > { %v3408_v28 = vsub.f32 %v5908_v40, %v3346_v42  ;;  %v3290_v21 = vpop.xlane.xlu1 %3289 }
 0x50a   : > { %4686 = vlog2.f32 %v3290_v21 }
 0x50b   : > { %3440 = vst [vmem:[%s6028_s15 + $0x8] sm:$0xff] %v3408_v28 }
 0x50e   : > { %v4681_v31 = vpop.eup %4680 }
 0x50f   : > { %v3356_v4 = vmul.f32 0.6931472, %v4681_v31 }
 0x510   : > { %v4683_v32 = vpop.eup %4682 }
 0x511   : > { %v3413_v43 = vsub.f32 %v5913_v41, %v3356_v4  ;;  %v3358_v55 = vmul.f32 0.6931472, %v4683_v32 }
 0x512   : > { %v4685_v22 = vpop.eup %4684 }
 0x513   : > { %3445 = vst [vmem:[%s6028_s15 + $0x30] sm:$0xff] %v3413_v43  ;;  %v3414_v53 = vsub.f32 %v5917_v63, %v3358_v55  ;;  %v3352_v62 = vmul.f32 0.6931472, %v4685_v22  ;;  %v3300_v23 = vpop.xlane.xlu0 %3299 }
 0x514   : > { %v4687_v3 = vpop.eup %4686  ;;  %4688 = vlog2.f32 %v3300_v23 }
 0x515   : > { %3446 = vst [vmem:[%s6028_s15 + $0x38] sm:$0xff] %v3414_v53  ;;  %v3411_v40 = vsub.f32 %v5921_v37, %v3352_v62  ;;  %v3354_v1 = vmul.f32 0.6931472, %v4687_v3  ;;  %v3302_v5 = vpop.xlane.xlu1 %3301 }
 0x516   : > { %4690 = vlog2.f32 %v3302_v5 }
 0x517   : > { %3443 = vst [vmem:[%s6028_s15 + $0x20] sm:$0xff] %v3411_v40  ;;  %v3412_v41 = vsub.f32 %v5925_v61, %v3354_v1  ;;  %v3296_v17 = vpop.xlane.xlu0 %3295 }
 0x518   : > { %4692 = vlog2.f32 %v3296_v17 }
 0x519   : > { %3444 = vst [vmem:[%s6028_s15 + $0x28] sm:$0xff] %v3412_v41  ;;  %v3298_v2 = vpop.xlane.xlu1 %3297 }
 0x51a   : > { %4694 = vlog2.f32 %v3298_v2 }
 0x51e   : > { %v4689_v63 = vpop.eup %4688 }
 0x51f   : > { %v3364_v45 = vmul.f32 0.6931472, %v4689_v63 }
 0x520   : > { %v4691_v44 = vpop.eup %4690 }
 0x521   : > { %v3417_v39 = vsub.f32 %v5929_v13, %v3364_v45  ;;  %v3366_v37 = vmul.f32 0.6931472, %v4691_v44 }
 0x522   : > { %v4693_v51 = vpop.eup %4692 }
 0x523   : > { %3449 = vst [vmem:[%s6028_s15 + $0x50] sm:$0xff] %v3417_v39  ;;  %v3418_v12 = vsub.f32 %v5933_v16, %v3366_v37  ;;  %v3360_v33 = vmul.f32 0.6931472, %v4693_v51  ;;  %v3308_v61 = vpop.xlane.xlu0 %3307 }
 0x524   : > { %v4695_v30 = vpop.eup %4694  ;;  %4696 = vlog2.f32 %v3308_v61 }
 0x525   : > { %3450 = vst [vmem:[%s6028_s15 + $0x58] sm:$0xff] %v3418_v12  ;;  %v3415_v26 = vsub.f32 %v5937_v11, %v3360_v33  ;;  %v3362_v10 = vmul.f32 0.6931472, %v4695_v30  ;;  %v3310_v18 = vpop.xlane.xlu1 %3309 }
 0x526   : > { %4698 = vlog2.f32 %v3310_v18 }
 0x527   : > { %3447 = vst [vmem:[%s6028_s15 + $0x40] sm:$0xff] %v3415_v26  ;;  %v3416_v13 = vsub.f32 %v5941_v8, %v3362_v10  ;;  %v3304_v36 = vpop.xlane.xlu0 %3303 }
 0x528   : > { %4700 = vlog2.f32 %v3304_v36 }
 0x529   : > { %3448 = vst [vmem:[%s6028_s15 + $0x48] sm:$0xff] %v3416_v13  ;;  %v3306_v7 = vpop.xlane.xlu1 %3305 }
 0x52a   : > { %4702 = vlog2.f32 %v3306_v7 }
 0x52e   : > { %v4697_v16 = vpop.eup %4696 }
 0x52f   : > { %v3372_v58 = vmul.f32 0.6931472, %v4697_v16 }
 0x530   : > { %v4699_v20 = vpop.eup %4698 }
 0x531   : > { %v3421_v38 = vsub.f32 %v5945_v56, %v3372_v58  ;;  %v3374_v11 = vmul.f32 0.6931472, %v4699_v20 }
 0x532   : > { %v4701_v35 = vpop.eup %4700 }
 0x533   : > { %3453 = vst [vmem:[%s6028_s15 + $0x70] sm:$0xff] %v3421_v38  ;;  %v3422_v60 = vsub.f32 %v5949_v0, %v3374_v11  ;;  %v3368_v42 = vmul.f32 0.6931472, %v4701_v35  ;;  %v3316_v8 = vpop.xlane.xlu0 %3315 }
 0x534   : > { %v4703_v14 = vpop.eup %4702  ;;  %4704 = vlog2.f32 %v3316_v8 }
 0x535   : > { %3454 = vst [vmem:[%s6028_s15 + $0x78] sm:$0xff] %v3422_v60  ;;  %v3419_v28 = vsub.f32 %v5953_v49, %v3368_v42  ;;  %v3370_v21 = vmul.f32 0.6931472, %v4703_v14  ;;  %v3318_v31 = vpop.xlane.xlu1 %3317 }
 0x536   : > { %4706 = vlog2.f32 %v3318_v31 }
 0x537   : > { %3451 = vst [vmem:[%s6028_s15 + $0x60] sm:$0xff] %v3419_v28  ;;  %v3420_v56 = vsub.f32 %v5957_v27, %v3370_v21  ;;  %v3312_v4 = vpop.xlane.xlu0 %3311 }
 0x538   : > { %4708 = vlog2.f32 %v3312_v4 }
 0x539   : > { %3452 = vst [vmem:[%s6028_s15 + $0x68] sm:$0xff] %v3420_v56  ;;  %v3314_v32 = vpop.xlane.xlu1 %3313 }
 0x53a   : > { %4710 = vlog2.f32 %v3314_v32 }
 0x53e   : > { %v4705_v0 = vpop.eup %4704 }
 0x53f   : > { %v3380_v43 = vmul.f32 0.6931472, %v4705_v0 }
 0x540   : > { %v4707_v55 = vpop.eup %4706 }
 0x541   : > { %v3425_v22 = vsub.f32 %v5961_v15, %v3380_v43  ;;  %v3382_v49 = vmul.f32 0.6931472, %v4707_v55 }
 0x542   : > { %v4709_v53 = vpop.eup %4708 }
 0x543   : > { %3457 = vst [vmem:[%s6028_s15 + $0x90] sm:$0xff] %v3425_v22  ;;  %v3426_v62 = vsub.f32 %v5965_v6, %v3382_v49  ;;  %v3376_v23 = vmul.f32 0.6931472, %v4709_v53  ;;  %v3324_v27 = vpop.xlane.xlu0 %3323 }
 0x544   : > { %v4711_v3 = vpop.eup %4710  ;;  %4712 = vlog2.f32 %v3324_v27 }
 0x545   : > { %3458 = vst [vmem:[%s6028_s15 + $0x98] sm:$0xff] %v3426_v62  ;;  %v3423_v40 = vsub.f32 %v5969_v59, %v3376_v23  ;;  %v3378_v1 = vmul.f32 0.6931472, %v4711_v3  ;;  %v3326_v5 = vpop.xlane.xlu1 %3325 }
 0x546   : > { %4714 = vlog2.f32 %v3326_v5 }
 0x547   : > { %3455 = vst [vmem:[%s6028_s15 + $0x80] sm:$0xff] %v3423_v40  ;;  %v3424_v15 = vsub.f32 %v5973_v9, %v3378_v1  ;;  %v3320_v41 = vpop.xlane.xlu0 %3319 }
 0x548   : > { %4716 = vlog2.f32 %v3320_v41 }
 0x549   : > { %3456 = vst [vmem:[%s6028_s15 + $0x88] sm:$0xff] %v3424_v15  ;;  %v3322_v17 = vpop.xlane.xlu1 %3321 }
 0x54a   : > { %4718 = vlog2.f32 %v3322_v17 }
 0x54e   : > { %v4713_v6 = vpop.eup %4712 }
 0x54f   : > { %v3388_v2 = vmul.f32 0.6931472, %v4713_v6 }
 0x550   : > { %v4715_v63 = vpop.eup %4714 }
 0x551   : > { %v3429_v45 = vsub.f32 %v5977_v46, %v3388_v2  ;;  %v3390_v59 = vmul.f32 0.6931472, %v4715_v63 }
 0x552   : > { %v4717_v44 = vpop.eup %4716 }
 0x553   : > { %3461 = vst [vmem:[%s6028_s15 + $0xb0] sm:$0xff] %v3429_v45  ;;  %v3430_v39 = vsub.f32 %v5981_v25, %v3390_v59  ;;  %v3384_v37 = vmul.f32 0.6931472, %v4717_v44  ;;  %v3332_v9 = vpop.xlane.xlu0 %3331 }
 0x554   : > { %v4719_v51 = vpop.eup %4718  ;;  %4720 = vlog2.f32 %v3332_v9 }
 0x555   : > { %3462 = vst [vmem:[%s6028_s15 + $0xb8] sm:$0xff] %v3430_v39  ;;  %v3427_v12 = vsub.f32 %v5985_v57, %v3384_v37  ;;  %v3386_v33 = vmul.f32 0.6931472, %v4719_v51  ;;  %v3334_v61 = vpop.xlane.xlu1 %3333 }
 0x556   : > { %4722 = vlog2.f32 %v3334_v61 }
 0x557   : > { %3459 = vst [vmem:[%s6028_s15 + $0xa0] sm:$0xff] %v3427_v12  ;;  %v3428_v46 = vsub.f32 %v5989_v24, %v3386_v33  ;;  %v3328_v30 = vpop.xlane.xlu0 %3327 }
 0x558   : > { %4724 = vlog2.f32 %v3328_v30 }
 0x559   : > { %3460 = vst [vmem:[%s6028_s15 + $0xa8] sm:$0xff] %v3428_v46  ;;  %v3330_v26 = vpop.xlane.xlu1 %3329 }
 0x55a   : > { %4726 = vlog2.f32 %v3330_v26 }
 0x55e   : > { %v4721_v25 = vpop.eup %4720 }
 0x55f   : > { %v3396_v10 = vmul.f32 0.6931472, %v4721_v25 }
 0x560   : > { %v4723_v18 = vpop.eup %4722 }
 0x561   : > { %v3433_v13 = vsub.f32 %v5993_v29, %v3396_v10  ;;  %v3398_v57 = vmul.f32 0.6931472, %v4723_v18 }
 0x562   : > { %v4725_v36 = vpop.eup %4724 }
 0x563   : > { %3465 = vst [vmem:[%s6028_s15 + $0xd0] sm:$0xff] %v3433_v13  ;;  %v3434_v7 = vsub.f32 %v5997_v34, %v3398_v57  ;;  %v3392_v16 = vmul.f32 0.6931472, %v4725_v36 }
 0x564   : > { %v4727_v24 = vpop.eup %4726  ;;  %v3336_v58 = vpop.xlane.xlu0 %3335 }
 0x565   : > { %3466 = vst [vmem:[%s6028_s15 + $0xd8] sm:$0xff] %v3434_v7  ;;  %v3431_v20 = vsub.f32 %v6001_v19, %v3392_v16  ;;  %v3394_v38 = vmul.f32 0.6931472, %v4727_v24  ;;  %4728 = vlog2.f32 %v3336_v58 }
 0x566   : > { %v3338_v11 = vpop.xlane.xlu1 %3337 }
 0x567   : > { %3463 = vst [vmem:[%s6028_s15 + $0xc0] sm:$0xff] %v3431_v20  ;;  %v3432_v35 = vsub.f32 %v6005_v47, %v3394_v38  ;;  %4730 = vlog2.f32 %v3338_v11 }
 0x568   : > { %v3340_v29 = vpop.xlane.xlu0 %3339 }
 0x569   : > { %3464 = vst [vmem:[%s6028_s15 + $0xc8] sm:$0xff] %v3432_v35  ;;  %4732 = vlog2.f32 %v3340_v29 }
 0x56a   : > { %v3342_v34 = vpop.xlane.xlu1 %3341 }
 0x56b   : > { %4734 = vlog2.f32 %v3342_v34 }
 0x56f   : > { %v4729_v60 = vpop.eup %4728 }
 0x570   : > { %v3400_v42 = vmul.f32 0.6931472, %v4729_v60 }
 0x571   : > { %v4731_v8 = vpop.eup %4730 }
 0x572   : > { %v3435_v19 = vsub.f32 %v6009_v52, %v3400_v42  ;;  %v3402_v14 = vmul.f32 0.6931472, %v4731_v8 }
 0x573   : > { %v4733_v28 = vpop.eup %4732 }
 0x574   : > { %3467 = vst [vmem:[%s6028_s15 + $0xe0] sm:$0xff] %v3435_v19  ;;  %v3436_v21 = vsub.f32 %v6013_v54, %v3402_v14  ;;  %v3404_v47 = vmul.f32 0.6931472, %v4733_v28 }
 0x575   : > { %v4735_v31 = vpop.eup %4734 }
 0x576   : > { %3468 = vst [vmem:[%s6028_s15 + $0xe8] sm:$0xff] %v3436_v21  ;;  %v3437_v56 = vsub.f32 %v6017_v50, %v3404_v47  ;;  %v3406_v4 = vmul.f32 0.6931472, %v4735_v31 }
 0x578   : > { %3469 = vst [vmem:[%s6028_s15 + $0xf0] sm:$0xff] %v3437_v56  ;;  %v3438_v32 = vsub.f32 %v6021_v48, %v3406_v4 }
 0x57a   : > { %3470 = vst [vmem:[%s6028_s15 + $0xf8] sm:$0xff] %v3438_v32 }
 0x57b PF: > { %s17_s24 = sadd.s32 1, %s4742_s24  }
 0x57c   : > { %p14_p4 = scmp.ge.s32.totalorder %s17_s24, 4  }
 0x57e   :  { %16 = sbr.rel (!%p14_p4) target bundleno = 1 (0x1), region = 78 }

</bundles_post_ra>
